<compile_context>
chip_gen: v7x
topology: tpu7x:2x2x1
jax: 0.10.0
libtpu: 0.0.40
codegen_flags: <defaults>
</compile_context>

<pallas_src>
import functools
import itertools

import numpy as np
import jax
import jax.numpy as jnp
from jax.experimental import pallas as pl
from jax.experimental.pallas import tpu as pltpu


# ----------------------------- helpers --------------------------------------

def _round_up(x, m):
    return (x + m - 1) // m * m


def _cparams(n_parallel):
    return pltpu.CompilerParams(
        dimension_semantics=("parallel",) * n_parallel,
        vmem_limit_bytes=32 * 1024 * 1024)


# ----------------------------- Pallas kernels -------------------------------

def _cpe_kernel(xg_ref, x_ref, w_ref, scale_ref, shift_ref, o_ref):
    # xg: (27, TILE, C) gathered neighbor features; x: (TILE, C) residual input.
    # 27 unrolled VPU FMAs (no cross-sublane reduction); folded BN; fused residual.
    acc = xg_ref[0] * w_ref[0:1, :]
    for k in range(1, 27):
        acc = acc + xg_ref[k] * w_ref[k:k + 1, :]
    o_ref[...] = acc * scale_ref[...] + shift_ref[...] + x_ref[...]


def _ln_matmul_kernel(x_ref, g_ref, b_ref, w_ref, bias_ref, o_ref, *, eps=1e-5):
    # LayerNorm over channels fused with a Linear (bf16 operands, f32 accumulate).
    x = x_ref[...]
    mu = jnp.mean(x, axis=-1, keepdims=True)
    xc = x - mu
    var = jnp.mean(xc * xc, axis=-1, keepdims=True)
    xn = xc * jax.lax.rsqrt(var + eps) * g_ref[...] + b_ref[...]
    o_ref[...] = jnp.dot(xn.astype(jnp.bfloat16), w_ref[...],
                         preferred_element_type=jnp.float32) + bias_ref[...]


def _matmul_residual_kernel(x_ref, res_ref, w_ref, bias_ref, o_ref):
    # proj linear fused with the residual add.
    o_ref[...] = (jnp.dot(x_ref[...].astype(jnp.bfloat16), w_ref[...],
                          preferred_element_type=jnp.float32)
                  + bias_ref[...] + res_ref[...])


def _mlp_kernel(x_ref, g_ref, b_ref, w1_ref, b1_ref, w2_ref, b2_ref, o_ref, *, eps=1e-5):
    # LN2 + fc1 + GELU + fc2 + residual; the (TILE, hidden) intermediate never touches HBM.
    x = x_ref[...]
    mu = jnp.mean(x, axis=-1, keepdims=True)
    xc = x - mu
    var = jnp.mean(xc * xc, axis=-1, keepdims=True)
    xn = xc * jax.lax.rsqrt(var + eps) * g_ref[...] + b_ref[...]
    h = jnp.dot(xn.astype(jnp.bfloat16), w1_ref[...],
                preferred_element_type=jnp.float32) + b1_ref[...]
    # TODO(synk): torch.nn.GELU defaults to the exact erf form; tanh approximation used
    # for guaranteed TPU lowering (max abs deviation ~1e-3).
    h = jax.nn.gelu(h, approximate=True)
    y = jnp.dot(h.astype(jnp.bfloat16), w2_ref[...],
                preferred_element_type=jnp.float32) + b2_ref[...]
    o_ref[...] = x + y


def _attention_kernel(qkv_ref, bias_ref, o_ref, *, num_heads, head_dim, dim):
    # One grid step handles PB patches x all heads. qkv block: (PB, K, 3C) with the q slice
    # already scaled (folded into qkv_w/qkv_b). bias: (PB, H, K, K) = RPE + batch mask.
    qkv = qkv_ref[...]
    bias = bias_ref[...]
    outs = []
    for h in range(num_heads):
        lo = h * head_dim
        q = qkv[:, :, lo:lo + head_dim].astype(jnp.bfloat16)
        k = qkv[:, :, dim + lo:dim + lo + head_dim].astype(jnp.bfloat16)
        v = qkv[:, :, 2 * dim + lo:2 * dim + lo + head_dim].astype(jnp.bfloat16)
        s = jnp.einsum('bqc,bkc->bqk', q, k, preferred_element_type=jnp.float32)
        s = s + bias[:, h, :, :]
        m = jnp.max(s, axis=-1, keepdims=True)
        e = jnp.exp(s - m)
        p = e * pl.reciprocal(jnp.sum(e, axis=-1, keepdims=True), approx=True)
        outs.append(jnp.einsum('bqk,bkc->bqc', p.astype(jnp.bfloat16), v,
                               preferred_element_type=jnp.float32))
    o_ref[...] = jnp.concatenate(outs, axis=-1)   # (PB, K, C) in final row layout


# ----------------------------- kernel wrappers ------------------------------

def cpe_residual(data, nbr_idx_t, nbr_valid_t, dw_w, bn_scale, bn_shift, *, tile=128):
    n, c = data.shape
    # TODO(synk): the neighbor gather stays in XLA (data-dependent indices); an in-kernel DMA
    # gather would avoid materializing the (27, N, C) tensor in HBM.
    xg = jnp.where(nbr_valid_t[:, :, None], data[jnp.maximum(nbr_idx_t, 0)], 0.0)
    tm = min(tile, _round_up(n, 8))
    return pl.pallas_call(
        _cpe_kernel,
        out_shape=jax.ShapeDtypeStruct((n, c), jnp.float32),
        grid=(pl.cdiv(n, tm),),
        in_specs=[
            pl.BlockSpec((27, tm, c), lambda i: (0, i, 0)),
            pl.BlockSpec((tm, c), lambda i: (i, 0)),
            pl.BlockSpec((27, c), lambda i: (0, 0)),
            pl.BlockSpec((1, c), lambda i: (0, 0)),
            pl.BlockSpec((1, c), lambda i: (0, 0)),
        ],
        out_specs=pl.BlockSpec((tm, c), lambda i: (i, 0)),
        compiler_params=_cparams(1),
    )(xg, data, dw_w, bn_scale.reshape(1, -1), bn_shift.reshape(1, -1))


def ln_linear(x, g, b, w_bf16, bias, *, tile=512):
    n, cin = x.shape
    cout = w_bf16.shape[1]
    tm = min(tile, _round_up(n, 8))
    return pl.pallas_call(
        _ln_matmul_kernel,
        out_shape=jax.ShapeDtypeStruct((n, cout), jnp.float32),
        grid=(pl.cdiv(n, tm),),
        in_specs=[
            pl.BlockSpec((tm, cin), lambda i: (i, 0)),
            pl.BlockSpec((1, cin), lambda i: (0, 0)),
            pl.BlockSpec((1, cin), lambda i: (0, 0)),
            pl.BlockSpec((cin, cout), lambda i: (0, 0)),
            pl.BlockSpec((1, cout), lambda i: (0, 0)),
        ],
        out_specs=pl.BlockSpec((tm, cout), lambda i: (i, 0)),
        compiler_params=_cparams(1),
    )(x, g.reshape(1, -1), b.reshape(1, -1), w_bf16, bias.reshape(1, -1))


def matmul_residual(x, res, w_bf16, bias, *, tile=512):
    n, cin = x.shape
    cout = w_bf16.shape[1]
    tm = min(tile, _round_up(n, 8))
    return pl.pallas_call(
        _matmul_residual_kernel,
        out_shape=jax.ShapeDtypeStruct((n, cout), jnp.float32),
        grid=(pl.cdiv(n, tm),),
        in_specs=[
            pl.BlockSpec((tm, cin), lambda i: (i, 0)),
            pl.BlockSpec((tm, cout), lambda i: (i, 0)),
            pl.BlockSpec((cin, cout), lambda i: (0, 0)),
            pl.BlockSpec((1, cout), lambda i: (0, 0)),
        ],
        out_specs=pl.BlockSpec((tm, cout), lambda i: (i, 0)),
        compiler_params=_cparams(1),
    )(x, res, w_bf16, bias.reshape(1, -1))


def mlp_fused(x, g, b, w1_bf16, b1, w2_bf16, b2, *, tile=512):
    n, c = x.shape
    hid = w1_bf16.shape[1]
    tm = min(tile, _round_up(n, 8))
    return pl.pallas_call(
        _mlp_kernel,
        out_shape=jax.ShapeDtypeStruct((n, c), jnp.float32),
        grid=(pl.cdiv(n, tm),),
        in_specs=[
            pl.BlockSpec((tm, c), lambda i: (i, 0)),
            pl.BlockSpec((1, c), lambda i: (0, 0)),
            pl.BlockSpec((1, c), lambda i: (0, 0)),
            pl.BlockSpec((c, hid), lambda i: (0, 0)),
            pl.BlockSpec((1, hid), lambda i: (0, 0)),
            pl.BlockSpec((hid, c), lambda i: (0, 0)),
            pl.BlockSpec((1, c), lambda i: (0, 0)),
        ],
        out_specs=pl.BlockSpec((tm, c), lambda i: (i, 0)),
        compiler_params=_cparams(1),
    )(x, g.reshape(1, -1), b.reshape(1, -1), w1_bf16, b1.reshape(1, -1),
      w2_bf16, b2.reshape(1, -1))


def window_attention(qkv, bias, *, num_heads, head_dim, dim, patch_batch=8):
    nP, K, threeC = qkv.shape
    pb = min(patch_batch, nP)
    kern = functools.partial(_attention_kernel, num_heads=num_heads,
                             head_dim=head_dim, dim=dim)
    return pl.pallas_call(
        kern,
        out_shape=jax.ShapeDtypeStruct((nP, K, dim), jnp.float32),
        grid=(pl.cdiv(nP, pb),),
        in_specs=[
            pl.BlockSpec((pb, K, threeC), lambda i: (i, 0, 0)),
            pl.BlockSpec((pb, num_heads, K, K), lambda i: (i, 0, 0, 0)),
        ],
        out_specs=pl.BlockSpec((pb, K, dim), lambda i: (i, 0, 0)),
        compiler_params=_cparams(1),
    )(qkv, bias)


# ----------------------------- module glue ----------------------------------

def rpe_bias(rel_pos, table, pos_bnd, rpe_num, num_heads):
    # RPE.forward: table gather over clipped relative positions (XLA glue, tiny).
    mul = jnp.arange(3, dtype=jnp.int32) * rpe_num
    idx = jnp.clip(rel_pos, -pos_bnd, pos_bnd) + pos_bnd + mul
    out = table[idx.reshape(-1)]
    out = out.reshape(idx.shape + (num_heads,)).sum(axis=3)       # (nP, K, K, H)
    return jnp.transpose(out, (0, 3, 1, 2))                       # (nP, H, K, K)


def block_forward(data, p, cfg, oct, *, patch_size, num_heads, dim, nnum_t, nnum_a):
    K, H, C = patch_size, num_heads, dim
    Ch = C // H
    D, pos_bnd, rpe_num = cfg
    N, Na = nnum_t, nnum_a

    # --- CPE (OctreeDWConvBn) + residual, fused ---
    data = cpe_residual(data, oct["nbr_idx_t"], oct["nbr_valid_t"],
                        p["dw_w"], p["bn_scale"], p["bn_shift"])

    # --- attention: LN1 + QKV fused, windowed attention, proj + residual fused ---
    xpad = jnp.concatenate([data, jnp.zeros((Na - N, C), data.dtype)], axis=0)
    qkv = ln_linear(xpad, p["ln1_g"], p["ln1_b"], p["qkv_w"], p["qkv_b"])   # (Na, 3C)
    if D > 1:
        qkv = qkv.reshape(-1, K, D, 3 * C).transpose(0, 2, 1, 3).reshape(-1, K, 3 * C)
        rel_pos, mask = oct["dilate_pos"], oct["dilate_mask"]
    else:
        qkv = qkv.reshape(-1, K, 3 * C)
        rel_pos, mask = oct["rel_pos"], oct["patch_mask"]

    bias = rpe_bias(rel_pos, p["rpe_table"], pos_bnd, rpe_num, H)           # (nP, H, K, K)
    bias = bias + mask[:, None, :, :]

    o = window_attention(qkv, bias, num_heads=H, head_dim=Ch, dim=C)        # (nP, K, C)
    if D > 1:
        o = o.reshape(-1, D, K, C).transpose(0, 2, 1, 3).reshape(-1, C)
    else:
        o = o.reshape(-1, C)
    o = o[:N]                                                               # patch_reverse
    data = matmul_residual(o, data, p["proj_w"], p["proj_b"])

    # --- MLP (LN2 + fc1 + GELU + fc2) + residual, fused ---
    data = mlp_fused(data, p["ln2_g"], p["ln2_b"], p["fc1_w"], p["fc1_b"],
                     p["fc2_w"], p["fc2_b"])
    return data


@functools.partial(jax.jit, static_argnames=("patch_size", "num_heads", "dim",
                                              "block_cfg", "nnum_t", "nnum_a"))
def octformer_stage_forward(data, params, oct, *, patch_size, num_heads, dim,
                            block_cfg, nnum_t, nnum_a):
    for p, cfg in zip(params, block_cfg):
        data = block_forward(data, p, cfg, oct, patch_size=patch_size,
                             num_heads=num_heads, dim=dim,
                             nnum_t=nnum_t, nnum_a=nnum_a)
    return data


# ----------------------------- synthetic OctreeT ----------------------------

def build_octree_info(xyz, batch, batch_size, patch_size, dilation):
    N = xyz.shape[0]
    K, D = patch_size, dilation
    block_num = K * D
    Na = int(np.ceil(N / block_num) * block_num)

    batch_pad = np.concatenate([batch, np.full((Na - N,), batch_size, np.int32)])
    xyz_pad = np.concatenate([xyz, np.zeros((Na - N, 3), np.int32)], axis=0)

    def calc_mask(m):  # (nP, K) batch ids -> (nP, K, K) additive mask
        am = m[:, :, None].astype(np.float32) - m[:, None, :].astype(np.float32)
        return np.where(am != 0, -1000.0, 0.0).astype(np.float32)

    patch_mask = calc_mask(batch_pad.reshape(-1, K))
    dm = batch_pad.reshape(-1, K, D).transpose(0, 2, 1).reshape(-1, K)
    dilate_mask = calc_mask(dm)

    xv = xyz_pad.reshape(-1, K, 3)
    rel_pos = xv[:, :, None, :] - xv[:, None, :, :]
    xd = xyz_pad.reshape(-1, K, D, 3).transpose(0, 2, 1, 3).reshape(-1, K, 3)
    dilate_pos = xd[:, :, None, :] - xd[:, None, :, :]

    # TODO(synk): synthetic 3x3x3 neighbor table standing in for ocnn's octree neighbor search.
    offsets = np.array(list(itertools.product([-1, 0, 1], repeat=3)), np.int32)
    coord_map = {(int(batch[i]), int(xyz[i, 0]), int(xyz[i, 1]), int(xyz[i, 2])): i
                 for i in range(N)}
    nbr = np.full((N, 27), -1, np.int32)
    for i in range(N):
        for kk in range(27):
            key = (int(batch[i]),
                   int(xyz[i, 0] + offsets[kk, 0]),
                   int(xyz[i, 1] + offsets[kk, 1]),
                   int(xyz[i, 2] + offsets[kk, 2]))
            nbr[i, kk] = coord_map.get(key, -1)

    oct = dict(patch_mask=jnp.asarray(patch_mask),
               dilate_mask=jnp.asarray(dilate_mask),
               rel_pos=jnp.asarray(rel_pos, jnp.int32),
               dilate_pos=jnp.asarray(dilate_pos, jnp.int32),
               nbr_idx_t=jnp.asarray(nbr.T),            # (27, N)
               nbr_valid_t=jnp.asarray((nbr >= 0).T))   # (27, N)
    return oct, N, Na


# ----------------------------- parameter init -------------------------------

def init_params(key, dim, num_heads, patch_size, dilation, mlp_ratio, num_blocks):
    hidden = int(dim * mlp_ratio)
    bn_eps = 1e-5
    scale = (dim // num_heads) ** -0.5
    params, cfgs = [], []
    for i in range(num_blocks):
        d_i = 1 if i % 2 == 0 else dilation          # OctFormerStage alternating dilation
        pos_bnd = int(0.8 * patch_size * d_i ** 0.5)
        rpe_num = 2 * pos_bnd + 1
        key, *ks = jax.random.split(key, 12)

        def nrm(k, shape, s):
            return jax.random.normal(k, shape, jnp.float32) * s

        qkv_w = nrm(ks[1], (dim, 3 * dim), dim ** -0.5)
        qkv_b = nrm(ks[2], (3 * dim,), 0.02)
        # fold attention scale into the q slice: x@(Wq*s) + bq*s == (x@Wq + bq)*s
        qkv_w = qkv_w.at[:, :dim].multiply(scale)
        qkv_b = qkv_b.at[:dim].multiply(scale)

        params.append(dict(
            # OctreeDWConvBn (BN folded with torch defaults: mean=0, var=1, gamma=1, beta=0)
            dw_w=nrm(ks[0], (27, dim), 0.1),
            bn_scale=jnp.full((dim,), 1.0 / np.sqrt(1.0 + bn_eps), jnp.float32),
            bn_shift=jnp.zeros((dim,), jnp.float32),
            # norms
            ln1_g=jnp.ones((dim,), jnp.float32), ln1_b=jnp.zeros((dim,), jnp.float32),
            ln2_g=jnp.ones((dim,), jnp.float32), ln2_b=jnp.zeros((dim,), jnp.float32),
            # attention (matmul weights pre-cast to bf16 for MXU operands)
            qkv_w=qkv_w.astype(jnp.bfloat16), qkv_b=qkv_b,
            proj_w=nrm(ks[3], (dim, dim), dim ** -0.5).astype(jnp.bfloat16),
            proj_b=nrm(ks[4], (dim,), 0.02),
            rpe_table=nrm(ks[5], (3 * rpe_num, num_heads), 0.02),
            # MLP
            fc1_w=nrm(ks[6], (dim, hidden), dim ** -0.5).astype(jnp.bfloat16),
            fc1_b=nrm(ks[7], (hidden,), 0.02),
            fc2_w=nrm(ks[8], (hidden, dim), hidden ** -0.5).astype(jnp.bfloat16),
            fc2_b=nrm(ks[9], (dim,), 0.02),
        ))
        cfgs.append((d_i, pos_bnd, rpe_num))
    return tuple(params), tuple(cfgs)


# ----------------------------- main ------------------------------------------

if __name__ == "__main__":
    dim, num_heads, patch_size, dilation = 16, 2, 8, 2
    mlp_ratio, num_blocks = 4.0, 2
    batch_size, depth, N = 2, 4, 23

    # deterministic synthetic octree (node coords + batch ids), sorted by batch like ocnn
    rng = np.random.RandomState(0)
    xyz = rng.randint(0, 2 ** depth, size=(N, 3)).astype(np.int32)
    batch = np.sort(rng.randint(0, batch_size, size=(N,))).astype(np.int32)
    oct, nnum_t, nnum_a = build_octree_info(xyz, batch, batch_size, patch_size, dilation)

    key = jax.random.PRNGKey(0)
    kdata, kparams = jax.random.split(key)
    data = jax.random.normal(kdata, (N, dim), jnp.float32)
    params, block_cfg = init_params(kparams, dim, num_heads, patch_size, dilation,
                                    mlp_ratio, num_blocks)

    out = octformer_stage_forward(data, params, oct,
                                  patch_size=patch_size, num_heads=num_heads, dim=dim,
                                  block_cfg=block_cfg, nnum_t=nnum_t, nnum_a=nnum_a)
    out = jax.block_until_ready(out)
    assert out.shape == (N, dim) and out.dtype == jnp.float32
    assert bool(jnp.all(jnp.isfinite(out)))
    print("KERNEL_OK")
</pallas_src>

<mosaic_0001>
module attributes {stable_mosaic.version = 11 : i64} {
  func.func @_cpe_kernel(%arg0: i32, %arg1: memref<27x24x16xf32, #tpu.memory_space<vmem>>, %arg2: memref<24x16xf32, #tpu.memory_space<vmem>>, %arg3: memref<27x16xf32, #tpu.memory_space<vmem>>, %arg4: memref<1x16xf32, #tpu.memory_space<vmem>>, %arg5: memref<1x16xf32, #tpu.memory_space<vmem>>, %arg6: memref<24x16xf32, #tpu.memory_space<vmem>>) attributes {dimension_semantics = [#tpu.dimension_semantics<parallel>], iteration_bounds = array<i64: 1>, scalar_prefetch = 0 : i64, scratch_operands = 0 : i64, tpu.core_type = #tpu.core_type<tc>, window_params = [{transform_indices = @transform_0, window_bounds = array<i64: 27, 24, 16>}, {transform_indices = @transform_1, window_bounds = array<i64: 24, 16>}, {pipeline_mode = #tpu.pipeline_mode<synchronous>, transform_indices = @transform_2, window_bounds = array<i64: 27, 16>}, {pipeline_mode = #tpu.pipeline_mode<synchronous>, transform_indices = @transform_3, window_bounds = array<i64: 1, 16>}, {pipeline_mode = #tpu.pipeline_mode<synchronous>, transform_indices = @transform_4, window_bounds = array<i64: 1, 16>}, {transform_indices = @transform_5, window_bounds = array<i64: 24, 16>}]} {
    %c0 = arith.constant 0 : index
    %c0_0 = arith.constant 0 : index
    %c0_1 = arith.constant 0 : index
    %0 = vector.load %arg1[%c0, %c0_0, %c0_1] : memref<27x24x16xf32, #tpu.memory_space<vmem>>, vector<1x24x16xf32>
    %1 = vector.shape_cast %0 : vector<1x24x16xf32> to vector<24x16xf32>
    %c0_2 = arith.constant 0 : index
    %c0_3 = arith.constant 0 : index
    %2 = vector.load %arg3[%c0_2, %c0_3] : memref<27x16xf32, #tpu.memory_space<vmem>>, vector<1x16xf32>
    %3 = vector.broadcast %2 : vector<1x16xf32> to vector<24x16xf32>
    %4 = arith.mulf %1, %3 : vector<24x16xf32>
    %c1 = arith.constant 1 : index
    %c0_4 = arith.constant 0 : index
    %c0_5 = arith.constant 0 : index
    %5 = vector.load %arg1[%c1, %c0_4, %c0_5] : memref<27x24x16xf32, #tpu.memory_space<vmem>>, vector<1x24x16xf32>
    %6 = vector.shape_cast %5 : vector<1x24x16xf32> to vector<24x16xf32>
    %c1_6 = arith.constant 1 : index
    %c0_7 = arith.constant 0 : index
    %7 = vector.load %arg3[%c1_6, %c0_7] : memref<27x16xf32, #tpu.memory_space<vmem>>, vector<1x16xf32>
    %8 = vector.broadcast %7 : vector<1x16xf32> to vector<24x16xf32>
    %9 = arith.mulf %6, %8 : vector<24x16xf32>
    %10 = arith.addf %4, %9 : vector<24x16xf32>
    %c2 = arith.constant 2 : index
    %c0_8 = arith.constant 0 : index
    %c0_9 = arith.constant 0 : index
    %11 = vector.load %arg1[%c2, %c0_8, %c0_9] : memref<27x24x16xf32, #tpu.memory_space<vmem>>, vector<1x24x16xf32>
    %12 = vector.shape_cast %11 : vector<1x24x16xf32> to vector<24x16xf32>
    %c2_10 = arith.constant 2 : index
    %c0_11 = arith.constant 0 : index
    %13 = vector.load %arg3[%c2_10, %c0_11] : memref<27x16xf32, #tpu.memory_space<vmem>>, vector<1x16xf32>
    %14 = vector.broadcast %13 : vector<1x16xf32> to vector<24x16xf32>
    %15 = arith.mulf %12, %14 : vector<24x16xf32>
    %16 = arith.addf %10, %15 : vector<24x16xf32>
    %c3 = arith.constant 3 : index
    %c0_12 = arith.constant 0 : index
    %c0_13 = arith.constant 0 : index
    %17 = vector.load %arg1[%c3, %c0_12, %c0_13] : memref<27x24x16xf32, #tpu.memory_space<vmem>>, vector<1x24x16xf32>
    %18 = vector.shape_cast %17 : vector<1x24x16xf32> to vector<24x16xf32>
    %c3_14 = arith.constant 3 : index
    %c0_15 = arith.constant 0 : index
    %19 = vector.load %arg3[%c3_14, %c0_15] : memref<27x16xf32, #tpu.memory_space<vmem>>, vector<1x16xf32>
    %20 = vector.broadcast %19 : vector<1x16xf32> to vector<24x16xf32>
    %21 = arith.mulf %18, %20 : vector<24x16xf32>
    %22 = arith.addf %16, %21 : vector<24x16xf32>
    %c4 = arith.constant 4 : index
    %c0_16 = arith.constant 0 : index
    %c0_17 = arith.constant 0 : index
    %23 = vector.load %arg1[%c4, %c0_16, %c0_17] : memref<27x24x16xf32, #tpu.memory_space<vmem>>, vector<1x24x16xf32>
    %24 = vector.shape_cast %23 : vector<1x24x16xf32> to vector<24x16xf32>
    %c4_18 = arith.constant 4 : index
    %c0_19 = arith.constant 0 : index
    %25 = vector.load %arg3[%c4_18, %c0_19] : memref<27x16xf32, #tpu.memory_space<vmem>>, vector<1x16xf32>
    %26 = vector.broadcast %25 : vector<1x16xf32> to vector<24x16xf32>
    %27 = arith.mulf %24, %26 : vector<24x16xf32>
    %28 = arith.addf %22, %27 : vector<24x16xf32>
    %c5 = arith.constant 5 : index
    %c0_20 = arith.constant 0 : index
    %c0_21 = arith.constant 0 : index
    %29 = vector.load %arg1[%c5, %c0_20, %c0_21] : memref<27x24x16xf32, #tpu.memory_space<vmem>>, vector<1x24x16xf32>
    %30 = vector.shape_cast %29 : vector<1x24x16xf32> to vector<24x16xf32>
    %c5_22 = arith.constant 5 : index
    %c0_23 = arith.constant 0 : index
    %31 = vector.load %arg3[%c5_22, %c0_23] : memref<27x16xf32, #tpu.memory_space<vmem>>, vector<1x16xf32>
    %32 = vector.broadcast %31 : vector<1x16xf32> to vector<24x16xf32>
    %33 = arith.mulf %30, %32 : vector<24x16xf32>
    %34 = arith.addf %28, %33 : vector<24x16xf32>
    %c6 = arith.constant 6 : index
    %c0_24 = arith.constant 0 : index
    %c0_25 = arith.constant 0 : index
    %35 = vector.load %arg1[%c6, %c0_24, %c0_25] : memref<27x24x16xf32, #tpu.memory_space<vmem>>, vector<1x24x16xf32>
    %36 = vector.shape_cast %35 : vector<1x24x16xf32> to vector<24x16xf32>
    %c6_26 = arith.constant 6 : index
    %c0_27 = arith.constant 0 : index
    %37 = vector.load %arg3[%c6_26, %c0_27] : memref<27x16xf32, #tpu.memory_space<vmem>>, vector<1x16xf32>
    %38 = vector.broadcast %37 : vector<1x16xf32> to vector<24x16xf32>
    %39 = arith.mulf %36, %38 : vector<24x16xf32>
    %40 = arith.addf %34, %39 : vector<24x16xf32>
    %c7 = arith.constant 7 : index
    %c0_28 = arith.constant 0 : index
    %c0_29 = arith.constant 0 : index
    %41 = vector.load %arg1[%c7, %c0_28, %c0_29] : memref<27x24x16xf32, #tpu.memory_space<vmem>>, vector<1x24x16xf32>
    %42 = vector.shape_cast %41 : vector<1x24x16xf32> to vector<24x16xf32>
    %c7_30 = arith.constant 7 : index
    %c0_31 = arith.constant 0 : index
    %43 = vector.load %arg3[%c7_30, %c0_31] : memref<27x16xf32, #tpu.memory_space<vmem>>, vector<1x16xf32>
    %44 = vector.broadcast %43 : vector<1x16xf32> to vector<24x16xf32>
    %45 = arith.mulf %42, %44 : vector<24x16xf32>
    %46 = arith.addf %40, %45 : vector<24x16xf32>
    %c8 = arith.constant 8 : index
    %c0_32 = arith.constant 0 : index
    %c0_33 = arith.constant 0 : index
    %47 = vector.load %arg1[%c8, %c0_32, %c0_33] : memref<27x24x16xf32, #tpu.memory_space<vmem>>, vector<1x24x16xf32>
    %48 = vector.shape_cast %47 : vector<1x24x16xf32> to vector<24x16xf32>
    %c8_34 = arith.constant 8 : index
    %c0_35 = arith.constant 0 : index
    %49 = vector.load %arg3[%c8_34, %c0_35] : memref<27x16xf32, #tpu.memory_space<vmem>>, vector<1x16xf32>
    %50 = vector.broadcast %49 : vector<1x16xf32> to vector<24x16xf32>
    %51 = arith.mulf %48, %50 : vector<24x16xf32>
    %52 = arith.addf %46, %51 : vector<24x16xf32>
    %c9 = arith.constant 9 : index
    %c0_36 = arith.constant 0 : index
    %c0_37 = arith.constant 0 : index
    %53 = vector.load %arg1[%c9, %c0_36, %c0_37] : memref<27x24x16xf32, #tpu.memory_space<vmem>>, vector<1x24x16xf32>
    %54 = vector.shape_cast %53 : vector<1x24x16xf32> to vector<24x16xf32>
    %c9_38 = arith.constant 9 : index
    %c0_39 = arith.constant 0 : index
    %55 = vector.load %arg3[%c9_38, %c0_39] : memref<27x16xf32, #tpu.memory_space<vmem>>, vector<1x16xf32>
    %56 = vector.broadcast %55 : vector<1x16xf32> to vector<24x16xf32>
    %57 = arith.mulf %54, %56 : vector<24x16xf32>
    %58 = arith.addf %52, %57 : vector<24x16xf32>
    %c10 = arith.constant 10 : index
    %c0_40 = arith.constant 0 : index
    %c0_41 = arith.constant 0 : index
    %59 = vector.load %arg1[%c10, %c0_40, %c0_41] : memref<27x24x16xf32, #tpu.memory_space<vmem>>, vector<1x24x16xf32>
    %60 = vector.shape_cast %59 : vector<1x24x16xf32> to vector<24x16xf32>
    %c10_42 = arith.constant 10 : index
    %c0_43 = arith.constant 0 : index
    %61 = vector.load %arg3[%c10_42, %c0_43] : memref<27x16xf32, #tpu.memory_space<vmem>>, vector<1x16xf32>
    %62 = vector.broadcast %61 : vector<1x16xf32> to vector<24x16xf32>
    %63 = arith.mulf %60, %62 : vector<24x16xf32>
    %64 = arith.addf %58, %63 : vector<24x16xf32>
    %c11 = arith.constant 11 : index
    %c0_44 = arith.constant 0 : index
    %c0_45 = arith.constant 0 : index
    %65 = vector.load %arg1[%c11, %c0_44, %c0_45] : memref<27x24x16xf32, #tpu.memory_space<vmem>>, vector<1x24x16xf32>
    %66 = vector.shape_cast %65 : vector<1x24x16xf32> to vector<24x16xf32>
    %c11_46 = arith.constant 11 : index
    %c0_47 = arith.constant 0 : index
    %67 = vector.load %arg3[%c11_46, %c0_47] : memref<27x16xf32, #tpu.memory_space<vmem>>, vector<1x16xf32>
    %68 = vector.broadcast %67 : vector<1x16xf32> to vector<24x16xf32>
    %69 = arith.mulf %66, %68 : vector<24x16xf32>
    %70 = arith.addf %64, %69 : vector<24x16xf32>
    %c12 = arith.constant 12 : index
    %c0_48 = arith.constant 0 : index
    %c0_49 = arith.constant 0 : index
    %71 = vector.load %arg1[%c12, %c0_48, %c0_49] : memref<27x24x16xf32, #tpu.memory_space<vmem>>, vector<1x24x16xf32>
    %72 = vector.shape_cast %71 : vector<1x24x16xf32> to vector<24x16xf32>
    %c12_50 = arith.constant 12 : index
    %c0_51 = arith.constant 0 : index
    %73 = vector.load %arg3[%c12_50, %c0_51] : memref<27x16xf32, #tpu.memory_space<vmem>>, vector<1x16xf32>
    %74 = vector.broadcast %73 : vector<1x16xf32> to vector<24x16xf32>
    %75 = arith.mulf %72, %74 : vector<24x16xf32>
    %76 = arith.addf %70, %75 : vector<24x16xf32>
    %c13 = arith.constant 13 : index
    %c0_52 = arith.constant 0 : index
    %c0_53 = arith.constant 0 : index
    %77 = vector.load %arg1[%c13, %c0_52, %c0_53] : memref<27x24x16xf32, #tpu.memory_space<vmem>>, vector<1x24x16xf32>
    %78 = vector.shape_cast %77 : vector<1x24x16xf32> to vector<24x16xf32>
    %c13_54 = arith.constant 13 : index
    %c0_55 = arith.constant 0 : index
    %79 = vector.load %arg3[%c13_54, %c0_55] : memref<27x16xf32, #tpu.memory_space<vmem>>, vector<1x16xf32>
    %80 = vector.broadcast %79 : vector<1x16xf32> to vector<24x16xf32>
    %81 = arith.mulf %78, %80 : vector<24x16xf32>
    %82 = arith.addf %76, %81 : vector<24x16xf32>
    %c14 = arith.constant 14 : index
    %c0_56 = arith.constant 0 : index
    %c0_57 = arith.constant 0 : index
    %83 = vector.load %arg1[%c14, %c0_56, %c0_57] : memref<27x24x16xf32, #tpu.memory_space<vmem>>, vector<1x24x16xf32>
    %84 = vector.shape_cast %83 : vector<1x24x16xf32> to vector<24x16xf32>
    %c14_58 = arith.constant 14 : index
    %c0_59 = arith.constant 0 : index
    %85 = vector.load %arg3[%c14_58, %c0_59] : memref<27x16xf32, #tpu.memory_space<vmem>>, vector<1x16xf32>
    %86 = vector.broadcast %85 : vector<1x16xf32> to vector<24x16xf32>
    %87 = arith.mulf %84, %86 : vector<24x16xf32>
    %88 = arith.addf %82, %87 : vector<24x16xf32>
    %c15 = arith.constant 15 : index
    %c0_60 = arith.constant 0 : index
    %c0_61 = arith.constant 0 : index
    %89 = vector.load %arg1[%c15, %c0_60, %c0_61] : memref<27x24x16xf32, #tpu.memory_space<vmem>>, vector<1x24x16xf32>
    %90 = vector.shape_cast %89 : vector<1x24x16xf32> to vector<24x16xf32>
    %c15_62 = arith.constant 15 : index
    %c0_63 = arith.constant 0 : index
    %91 = vector.load %arg3[%c15_62, %c0_63] : memref<27x16xf32, #tpu.memory_space<vmem>>, vector<1x16xf32>
    %92 = vector.broadcast %91 : vector<1x16xf32> to vector<24x16xf32>
    %93 = arith.mulf %90, %92 : vector<24x16xf32>
    %94 = arith.addf %88, %93 : vector<24x16xf32>
    %c16 = arith.constant 16 : index
    %c0_64 = arith.constant 0 : index
    %c0_65 = arith.constant 0 : index
    %95 = vector.load %arg1[%c16, %c0_64, %c0_65] : memref<27x24x16xf32, #tpu.memory_space<vmem>>, vector<1x24x16xf32>
    %96 = vector.shape_cast %95 : vector<1x24x16xf32> to vector<24x16xf32>
    %c16_66 = arith.constant 16 : index
    %c0_67 = arith.constant 0 : index
    %97 = vector.load %arg3[%c16_66, %c0_67] : memref<27x16xf32, #tpu.memory_space<vmem>>, vector<1x16xf32>
    %98 = vector.broadcast %97 : vector<1x16xf32> to vector<24x16xf32>
    %99 = arith.mulf %96, %98 : vector<24x16xf32>
    %100 = arith.addf %94, %99 : vector<24x16xf32>
    %c17 = arith.constant 17 : index
    %c0_68 = arith.constant 0 : index
    %c0_69 = arith.constant 0 : index
    %101 = vector.load %arg1[%c17, %c0_68, %c0_69] : memref<27x24x16xf32, #tpu.memory_space<vmem>>, vector<1x24x16xf32>
    %102 = vector.shape_cast %101 : vector<1x24x16xf32> to vector<24x16xf32>
    %c17_70 = arith.constant 17 : index
    %c0_71 = arith.constant 0 : index
    %103 = vector.load %arg3[%c17_70, %c0_71] : memref<27x16xf32, #tpu.memory_space<vmem>>, vector<1x16xf32>
    %104 = vector.broadcast %103 : vector<1x16xf32> to vector<24x16xf32>
    %105 = arith.mulf %102, %104 : vector<24x16xf32>
    %106 = arith.addf %100, %105 : vector<24x16xf32>
    %c18 = arith.constant 18 : index
    %c0_72 = arith.constant 0 : index
    %c0_73 = arith.constant 0 : index
    %107 = vector.load %arg1[%c18, %c0_72, %c0_73] : memref<27x24x16xf32, #tpu.memory_space<vmem>>, vector<1x24x16xf32>
    %108 = vector.shape_cast %107 : vector<1x24x16xf32> to vector<24x16xf32>
    %c18_74 = arith.constant 18 : index
    %c0_75 = arith.constant 0 : index
    %109 = vector.load %arg3[%c18_74, %c0_75] : memref<27x16xf32, #tpu.memory_space<vmem>>, vector<1x16xf32>
    %110 = vector.broadcast %109 : vector<1x16xf32> to vector<24x16xf32>
    %111 = arith.mulf %108, %110 : vector<24x16xf32>
    %112 = arith.addf %106, %111 : vector<24x16xf32>
    %c19 = arith.constant 19 : index
    %c0_76 = arith.constant 0 : index
    %c0_77 = arith.constant 0 : index
    %113 = vector.load %arg1[%c19, %c0_76, %c0_77] : memref<27x24x16xf32, #tpu.memory_space<vmem>>, vector<1x24x16xf32>
    %114 = vector.shape_cast %113 : vector<1x24x16xf32> to vector<24x16xf32>
    %c19_78 = arith.constant 19 : index
    %c0_79 = arith.constant 0 : index
    %115 = vector.load %arg3[%c19_78, %c0_79] : memref<27x16xf32, #tpu.memory_space<vmem>>, vector<1x16xf32>
    %116 = vector.broadcast %115 : vector<1x16xf32> to vector<24x16xf32>
    %117 = arith.mulf %114, %116 : vector<24x16xf32>
    %118 = arith.addf %112, %117 : vector<24x16xf32>
    %c20 = arith.constant 20 : index
    %c0_80 = arith.constant 0 : index
    %c0_81 = arith.constant 0 : index
    %119 = vector.load %arg1[%c20, %c0_80, %c0_81] : memref<27x24x16xf32, #tpu.memory_space<vmem>>, vector<1x24x16xf32>
    %120 = vector.shape_cast %119 : vector<1x24x16xf32> to vector<24x16xf32>
    %c20_82 = arith.constant 20 : index
    %c0_83 = arith.constant 0 : index
    %121 = vector.load %arg3[%c20_82, %c0_83] : memref<27x16xf32, #tpu.memory_space<vmem>>, vector<1x16xf32>
    %122 = vector.broadcast %121 : vector<1x16xf32> to vector<24x16xf32>
    %123 = arith.mulf %120, %122 : vector<24x16xf32>
    %124 = arith.addf %118, %123 : vector<24x16xf32>
    %c21 = arith.constant 21 : index
    %c0_84 = arith.constant 0 : index
    %c0_85 = arith.constant 0 : index
    %125 = vector.load %arg1[%c21, %c0_84, %c0_85] : memref<27x24x16xf32, #tpu.memory_space<vmem>>, vector<1x24x16xf32>
    %126 = vector.shape_cast %125 : vector<1x24x16xf32> to vector<24x16xf32>
    %c21_86 = arith.constant 21 : index
    %c0_87 = arith.constant 0 : index
    %127 = vector.load %arg3[%c21_86, %c0_87] : memref<27x16xf32, #tpu.memory_space<vmem>>, vector<1x16xf32>
    %128 = vector.broadcast %127 : vector<1x16xf32> to vector<24x16xf32>
    %129 = arith.mulf %126, %128 : vector<24x16xf32>
    %130 = arith.addf %124, %129 : vector<24x16xf32>
    %c22 = arith.constant 22 : index
    %c0_88 = arith.constant 0 : index
    %c0_89 = arith.constant 0 : index
    %131 = vector.load %arg1[%c22, %c0_88, %c0_89] : memref<27x24x16xf32, #tpu.memory_space<vmem>>, vector<1x24x16xf32>
    %132 = vector.shape_cast %131 : vector<1x24x16xf32> to vector<24x16xf32>
    %c22_90 = arith.constant 22 : index
    %c0_91 = arith.constant 0 : index
    %133 = vector.load %arg3[%c22_90, %c0_91] : memref<27x16xf32, #tpu.memory_space<vmem>>, vector<1x16xf32>
    %134 = vector.broadcast %133 : vector<1x16xf32> to vector<24x16xf32>
    %135 = arith.mulf %132, %134 : vector<24x16xf32>
    %136 = arith.addf %130, %135 : vector<24x16xf32>
    %c23 = arith.constant 23 : index
    %c0_92 = arith.constant 0 : index
    %c0_93 = arith.constant 0 : index
    %137 = vector.load %arg1[%c23, %c0_92, %c0_93] : memref<27x24x16xf32, #tpu.memory_space<vmem>>, vector<1x24x16xf32>
    %138 = vector.shape_cast %137 : vector<1x24x16xf32> to vector<24x16xf32>
    %c23_94 = arith.constant 23 : index
    %c0_95 = arith.constant 0 : index
    %139 = vector.load %arg3[%c23_94, %c0_95] : memref<27x16xf32, #tpu.memory_space<vmem>>, vector<1x16xf32>
    %140 = vector.broadcast %139 : vector<1x16xf32> to vector<24x16xf32>
    %141 = arith.mulf %138, %140 : vector<24x16xf32>
    %142 = arith.addf %136, %141 : vector<24x16xf32>
    %c24 = arith.constant 24 : index
    %c0_96 = arith.constant 0 : index
    %c0_97 = arith.constant 0 : index
    %143 = vector.load %arg1[%c24, %c0_96, %c0_97] : memref<27x24x16xf32, #tpu.memory_space<vmem>>, vector<1x24x16xf32>
    %144 = vector.shape_cast %143 : vector<1x24x16xf32> to vector<24x16xf32>
    %c24_98 = arith.constant 24 : index
    %c0_99 = arith.constant 0 : index
    %145 = vector.load %arg3[%c24_98, %c0_99] : memref<27x16xf32, #tpu.memory_space<vmem>>, vector<1x16xf32>
    %146 = vector.broadcast %145 : vector<1x16xf32> to vector<24x16xf32>
    %147 = arith.mulf %144, %146 : vector<24x16xf32>
    %148 = arith.addf %142, %147 : vector<24x16xf32>
    %c25 = arith.constant 25 : index
    %c0_100 = arith.constant 0 : index
    %c0_101 = arith.constant 0 : index
    %149 = vector.load %arg1[%c25, %c0_100, %c0_101] : memref<27x24x16xf32, #tpu.memory_space<vmem>>, vector<1x24x16xf32>
    %150 = vector.shape_cast %149 : vector<1x24x16xf32> to vector<24x16xf32>
    %c25_102 = arith.constant 25 : index
    %c0_103 = arith.constant 0 : index
    %151 = vector.load %arg3[%c25_102, %c0_103] : memref<27x16xf32, #tpu.memory_space<vmem>>, vector<1x16xf32>
    %152 = vector.broadcast %151 : vector<1x16xf32> to vector<24x16xf32>
    %153 = arith.mulf %150, %152 : vector<24x16xf32>
    %154 = arith.addf %148, %153 : vector<24x16xf32>
    %c26 = arith.constant 26 : index
    %c0_104 = arith.constant 0 : index
    %c0_105 = arith.constant 0 : index
    %155 = vector.load %arg1[%c26, %c0_104, %c0_105] : memref<27x24x16xf32, #tpu.memory_space<vmem>>, vector<1x24x16xf32>
    %156 = vector.shape_cast %155 : vector<1x24x16xf32> to vector<24x16xf32>
    %c26_106 = arith.constant 26 : index
    %c0_107 = arith.constant 0 : index
    %157 = vector.load %arg3[%c26_106, %c0_107] : memref<27x16xf32, #tpu.memory_space<vmem>>, vector<1x16xf32>
    %158 = vector.broadcast %157 : vector<1x16xf32> to vector<24x16xf32>
    %159 = arith.mulf %156, %158 : vector<24x16xf32>
    %160 = arith.addf %154, %159 : vector<24x16xf32>
    %c0_108 = arith.constant 0 : index
    %c0_109 = arith.constant 0 : index
    %161 = vector.load %arg4[%c0_108, %c0_109] : memref<1x16xf32, #tpu.memory_space<vmem>>, vector<1x16xf32>
    %162 = vector.broadcast %161 : vector<1x16xf32> to vector<24x16xf32>
    %163 = arith.mulf %160, %162 : vector<24x16xf32>
    %c0_110 = arith.constant 0 : index
    %c0_111 = arith.constant 0 : index
    %164 = vector.load %arg5[%c0_110, %c0_111] : memref<1x16xf32, #tpu.memory_space<vmem>>, vector<1x16xf32>
    %165 = vector.broadcast %164 : vector<1x16xf32> to vector<24x16xf32>
    %166 = arith.addf %163, %165 : vector<24x16xf32>
    %c0_112 = arith.constant 0 : index
    %c0_113 = arith.constant 0 : index
    %167 = vector.load %arg2[%c0_112, %c0_113] : memref<24x16xf32, #tpu.memory_space<vmem>>, vector<24x16xf32>
    %168 = arith.addf %166, %167 : vector<24x16xf32>
    %c0_114 = arith.constant 0 : index
    %c0_115 = arith.constant 0 : index
    %169 = vector.load %arg6[%c0_114, %c0_115] : memref<24x16xf32, #tpu.memory_space<vmem>>, vector<24x16xf32>
    tpu.vector_store %arg6[%c0_114, %c0_115], %168 {strides = array<i32>} : memref<24x16xf32, #tpu.memory_space<vmem>>, vector<24x16xf32>,
    return
  }
  func.func @transform_0(%arg0: i32) -> (i32, i32, i32) {
    %c0_i32 = arith.constant 0 : i32
    %c0_i32_0 = arith.constant 0 : i32
    %c0_i32_1 = arith.constant 0 : i32
    return %c0_i32, %arg0, %c0_i32_0 : i32, i32, i32
  }
  func.func @transform_1(%arg0: i32) -> (i32, i32) {
    %c0_i32 = arith.constant 0 : i32
    %c0_i32_0 = arith.constant 0 : i32
    return %arg0, %c0_i32 : i32, i32
  }
  func.func @transform_2(%arg0: i32) -> (i32, i32) {
    %c0_i32 = arith.constant 0 : i32
    %c0_i32_0 = arith.constant 0 : i32
    %c0_i32_1 = arith.constant 0 : i32
    return %c0_i32, %c0_i32_0 : i32, i32
  }
  func.func @transform_3(%arg0: i32) -> (i32, i32) {
    %c0_i32 = arith.constant 0 : i32
    %c0_i32_0 = arith.constant 0 : i32
    %c0_i32_1 = arith.constant 0 : i32
    return %c0_i32, %c0_i32_0 : i32, i32
  }
  func.func @transform_4(%arg0: i32) -> (i32, i32) {
    %c0_i32 = arith.constant 0 : i32
    %c0_i32_0 = arith.constant 0 : i32
    %c0_i32_1 = arith.constant 0 : i32
    return %c0_i32, %c0_i32_0 : i32, i32
  }
  func.func @transform_5(%arg0: i32) -> (i32, i32) {
    %c0_i32 = arith.constant 0 : i32
    %c0_i32_0 = arith.constant 0 : i32
    return %arg0, %c0_i32 : i32, i32
  }
}

module attributes {stable_mosaic.version = 11 : i64} {
  func.func @_ln_matmul_kernel(%arg0: i32, %arg1: memref<32x16xf32, #tpu.memory_space<vmem>>, %arg2: memref<1x16xf32, #tpu.memory_space<vmem>>, %arg3: memref<1x16xf32, #tpu.memory_space<vmem>>, %arg4: memref<16x48xbf16, #tpu.memory_space<vmem>>, %arg5: memref<1x48xf32, #tpu.memory_space<vmem>>, %arg6: memref<32x48xf32, #tpu.memory_space<vmem>>) attributes {dimension_semantics = [#tpu.dimension_semantics<parallel>], iteration_bounds = array<i64: 1>, scalar_prefetch = 0 : i64, scratch_operands = 0 : i64, tpu.core_type = #tpu.core_type<tc>, window_params = [{transform_indices = @transform_0, window_bounds = array<i64: 32, 16>}, {pipeline_mode = #tpu.pipeline_mode<synchronous>, transform_indices = @transform_1, window_bounds = array<i64: 1, 16>}, {pipeline_mode = #tpu.pipeline_mode<synchronous>, transform_indices = @transform_2, window_bounds = array<i64: 1, 16>}, {pipeline_mode = #tpu.pipeline_mode<synchronous>, transform_indices = @transform_3, window_bounds = array<i64: 16, 48>}, {pipeline_mode = #tpu.pipeline_mode<synchronous>, transform_indices = @transform_4, window_bounds = array<i64: 1, 48>}, {transform_indices = @transform_5, window_bounds = array<i64: 32, 48>}]} {
    %c0 = arith.constant 0 : index
    %c0_0 = arith.constant 0 : index
    %0 = vector.load %arg1[%c0, %c0_0] : memref<32x16xf32, #tpu.memory_space<vmem>>, vector<32x16xf32>
    %cst = arith.constant dense<0.000000e+00> : vector<32xf32>
    %1 = vector.multi_reduction <add>, %0, %cst [1] : vector<32x16xf32> to vector<32xf32>
    %2 = vector.shape_cast %1 : vector<32xf32> to vector<32x1xf32>
    %cst_1 = arith.constant 1.600000e+01 : f32
    %3 = vector.broadcast %cst_1 : f32 to vector<32x1xf32>
    %4 = arith.divf %2, %3 : vector<32x1xf32>
    %5 = vector.broadcast %4 : vector<32x1xf32> to vector<32x16xf32>
    %6 = arith.subf %0, %5 : vector<32x16xf32>
    %7 = arith.mulf %6, %6 : vector<32x16xf32>
    %cst_2 = arith.constant dense<0.000000e+00> : vector<32xf32>
    %8 = vector.multi_reduction <add>, %7, %cst_2 [1] : vector<32x16xf32> to vector<32xf32>
    %9 = vector.shape_cast %8 : vector<32xf32> to vector<32x1xf32>
    %cst_3 = arith.constant 1.600000e+01 : f32
    %10 = vector.broadcast %cst_3 : f32 to vector<32x1xf32>
    %11 = arith.divf %9, %10 : vector<32x1xf32>
    %cst_4 = arith.constant 9.99999974E-6 : f32
    %12 = vector.broadcast %cst_4 : f32 to vector<32x1xf32>
    %13 = arith.addf %11, %12 : vector<32x1xf32>
    %14 = math.rsqrt %13 : vector<32x1xf32>
    %15 = vector.broadcast %14 : vector<32x1xf32> to vector<32x16xf32>
    %16 = arith.mulf %6, %15 : vector<32x16xf32>
    %c0_5 = arith.constant 0 : index
    %c0_6 = arith.constant 0 : index
    %17 = vector.load %arg2[%c0_5, %c0_6] : memref<1x16xf32, #tpu.memory_space<vmem>>, vector<1x16xf32>
    %18 = vector.broadcast %17 : vector<1x16xf32> to vector<32x16xf32>
    %19 = arith.mulf %16, %18 : vector<32x16xf32>
    %c0_7 = arith.constant 0 : index
    %c0_8 = arith.constant 0 : index
    %20 = vector.load %arg3[%c0_7, %c0_8] : memref<1x16xf32, #tpu.memory_space<vmem>>, vector<1x16xf32>
    %21 = vector.broadcast %20 : vector<1x16xf32> to vector<32x16xf32>
    %22 = arith.addf %19, %21 : vector<32x16xf32>
    %23 = arith.truncf %22 : vector<32x16xf32> to vector<32x16xbf16>
    %c0_9 = arith.constant 0 : index
    %c0_10 = arith.constant 0 : index
    %24 = vector.load %arg4[%c0_9, %c0_10] : memref<16x48xbf16, #tpu.memory_space<vmem>>, vector<16x48xbf16>
    %cst_11 = arith.constant dense<0.000000e+00> : vector<32x48xf32>
    %25 = tpu.matmul %23, %24, %cst_11 {dimension_numbers = #tpu.dot_dimension_numbers<[1], [0], [0], [1], [0, 0, 1, 1], [], []>} : vector<32x16xbf16>, vector<16x48xbf16>, vector<32x48xf32> -> vector<32x48xf32>
    %c0_12 = arith.constant 0 : index
    %c0_13 = arith.constant 0 : index
    %26 = vector.load %arg5[%c0_12, %c0_13] : memref<1x48xf32, #tpu.memory_space<vmem>>, vector<1x48xf32>
    %27 = vector.broadcast %26 : vector<1x48xf32> to vector<32x48xf32>
    %28 = arith.addf %25, %27 : vector<32x48xf32>
    %c0_14 = arith.constant 0 : index
    %c0_15 = arith.constant 0 : index
    %29 = vector.load %arg6[%c0_14, %c0_15] : memref<32x48xf32, #tpu.memory_space<vmem>>, vector<32x48xf32>
    tpu.vector_store %arg6[%c0_14, %c0_15], %28 {strides = array<i32>} : memref<32x48xf32, #tpu.memory_space<vmem>>, vector<32x48xf32>,
    return
  }
  func.func @transform_0(%arg0: i32) -> (i32, i32) {
    %c0_i32 = arith.constant 0 : i32
    %c0_i32_0 = arith.constant 0 : i32
    return %arg0, %c0_i32 : i32, i32
  }
  func.func @transform_1(%arg0: i32) -> (i32, i32) {
    %c0_i32 = arith.constant 0 : i32
    %c0_i32_0 = arith.constant 0 : i32
    %c0_i32_1 = arith.constant 0 : i32
    return %c0_i32, %c0_i32_0 : i32, i32
  }
  func.func @transform_2(%arg0: i32) -> (i32, i32) {
    %c0_i32 = arith.constant 0 : i32
    %c0_i32_0 = arith.constant 0 : i32
    %c0_i32_1 = arith.constant 0 : i32
    return %c0_i32, %c0_i32_0 : i32, i32
  }
  func.func @transform_3(%arg0: i32) -> (i32, i32) {
    %c0_i32 = arith.constant 0 : i32
    %c0_i32_0 = arith.constant 0 : i32
    %c0_i32_1 = arith.constant 0 : i32
    return %c0_i32, %c0_i32_0 : i32, i32
  }
  func.func @transform_4(%arg0: i32) -> (i32, i32) {
    %c0_i32 = arith.constant 0 : i32
    %c0_i32_0 = arith.constant 0 : i32
    %c0_i32_1 = arith.constant 0 : i32
    return %c0_i32, %c0_i32_0 : i32, i32
  }
  func.func @transform_5(%arg0: i32) -> (i32, i32) {
    %c0_i32 = arith.constant 0 : i32
    %c0_i32_0 = arith.constant 0 : i32
    return %arg0, %c0_i32 : i32, i32
  }
}

module attributes {stable_mosaic.version = 11 : i64} {
  func.func @_matmul_residual_kernel(%arg0: i32, %arg1: memref<24x16xf32, #tpu.memory_space<vmem>>, %arg2: memref<24x16xf32, #tpu.memory_space<vmem>>, %arg3: memref<16x16xbf16, #tpu.memory_space<vmem>>, %arg4: memref<1x16xf32, #tpu.memory_space<vmem>>, %arg5: memref<24x16xf32, #tpu.memory_space<vmem>>) attributes {dimension_semantics = [#tpu.dimension_semantics<parallel>], iteration_bounds = array<i64: 1>, scalar_prefetch = 0 : i64, scratch_operands = 0 : i64, tpu.core_type = #tpu.core_type<tc>, window_params = [{transform_indices = @transform_0, window_bounds = array<i64: 24, 16>}, {transform_indices = @transform_1, window_bounds = array<i64: 24, 16>}, {pipeline_mode = #tpu.pipeline_mode<synchronous>, transform_indices = @transform_2, window_bounds = array<i64: 16, 16>}, {pipeline_mode = #tpu.pipeline_mode<synchronous>, transform_indices = @transform_3, window_bounds = array<i64: 1, 16>}, {transform_indices = @transform_4, window_bounds = array<i64: 24, 16>}]} {
    %c0 = arith.constant 0 : index
    %c0_0 = arith.constant 0 : index
    %0 = vector.load %arg1[%c0, %c0_0] : memref<24x16xf32, #tpu.memory_space<vmem>>, vector<24x16xf32>
    %1 = arith.truncf %0 : vector<24x16xf32> to vector<24x16xbf16>
    %c0_1 = arith.constant 0 : index
    %c0_2 = arith.constant 0 : index
    %2 = vector.load %arg3[%c0_1, %c0_2] : memref<16x16xbf16, #tpu.memory_space<vmem>>, vector<16x16xbf16>
    %cst = arith.constant dense<0.000000e+00> : vector<24x16xf32>
    %3 = tpu.matmul %1, %2, %cst {dimension_numbers = #tpu.dot_dimension_numbers<[1], [0], [0], [1], [0, 0, 1, 1], [], []>} : vector<24x16xbf16>, vector<16x16xbf16>, vector<24x16xf32> -> vector<24x16xf32>
    %c0_3 = arith.constant 0 : index
    %c0_4 = arith.constant 0 : index
    %4 = vector.load %arg4[%c0_3, %c0_4] : memref<1x16xf32, #tpu.memory_space<vmem>>, vector<1x16xf32>
    %5 = vector.broadcast %4 : vector<1x16xf32> to vector<24x16xf32>
    %6 = arith.addf %3, %5 : vector<24x16xf32>
    %c0_5 = arith.constant 0 : index
    %c0_6 = arith.constant 0 : index
    %7 = vector.load %arg2[%c0_5, %c0_6] : memref<24x16xf32, #tpu.memory_space<vmem>>, vector<24x16xf32>
    %8 = arith.addf %6, %7 : vector<24x16xf32>
    %c0_7 = arith.constant 0 : index
    %c0_8 = arith.constant 0 : index
    %9 = vector.load %arg5[%c0_7, %c0_8] : memref<24x16xf32, #tpu.memory_space<vmem>>, vector<24x16xf32>
    tpu.vector_store %arg5[%c0_7, %c0_8], %8 {strides = array<i32>} : memref<24x16xf32, #tpu.memory_space<vmem>>, vector<24x16xf32>,
    return
  }
  func.func @transform_0(%arg0: i32) -> (i32, i32) {
    %c0_i32 = arith.constant 0 : i32
    %c0_i32_0 = arith.constant 0 : i32
    return %arg0, %c0_i32 : i32, i32
  }
  func.func @transform_1(%arg0: i32) -> (i32, i32) {
    %c0_i32 = arith.constant 0 : i32
    %c0_i32_0 = arith.constant 0 : i32
    return %arg0, %c0_i32 : i32, i32
  }
  func.func @transform_2(%arg0: i32) -> (i32, i32) {
    %c0_i32 = arith.constant 0 : i32
    %c0_i32_0 = arith.constant 0 : i32
    %c0_i32_1 = arith.constant 0 : i32
    return %c0_i32, %c0_i32_0 : i32, i32
  }
  func.func @transform_3(%arg0: i32) -> (i32, i32) {
    %c0_i32 = arith.constant 0 : i32
    %c0_i32_0 = arith.constant 0 : i32
    %c0_i32_1 = arith.constant 0 : i32
    return %c0_i32, %c0_i32_0 : i32, i32
  }
  func.func @transform_4(%arg0: i32) -> (i32, i32) {
    %c0_i32 = arith.constant 0 : i32
    %c0_i32_0 = arith.constant 0 : i32
    return %arg0, %c0_i32 : i32, i32
  }
}

module attributes {stable_mosaic.version = 11 : i64} {
  func.func @_attention_kernel(%arg0: i32, %arg1: memref<4x8x48xf32, #tpu.memory_space<vmem>>, %arg2: memref<4x2x8x8xf32, #tpu.memory_space<vmem>>, %arg3: memref<4x8x16xf32, #tpu.memory_space<vmem>>) attributes {dimension_semantics = [#tpu.dimension_semantics<parallel>], iteration_bounds = array<i64: 1>, scalar_prefetch = 0 : i64, scratch_operands = 0 : i64, tpu.core_type = #tpu.core_type<tc>, window_params = [{transform_indices = @transform_0, window_bounds = array<i64: 4, 8, 48>}, {transform_indices = @transform_1, window_bounds = array<i64: 4, 2, 8, 8>}, {transform_indices = @transform_2, window_bounds = array<i64: 4, 8, 16>}]} {
    %c0 = arith.constant 0 : index
    %c0_0 = arith.constant 0 : index
    %c0_1 = arith.constant 0 : index
    %0 = vector.load %arg1[%c0, %c0_0, %c0_1] : memref<4x8x48xf32, #tpu.memory_space<vmem>>, vector<4x8x48xf32>
    %c0_2 = arith.constant 0 : index
    %c0_3 = arith.constant 0 : index
    %c0_4 = arith.constant 0 : index
    %c0_5 = arith.constant 0 : index
    %1 = vector.load %arg2[%c0_2, %c0_3, %c0_4, %c0_5] : memref<4x2x8x8xf32, #tpu.memory_space<vmem>>, vector<4x2x8x8xf32>
    %2 = vector.extract_strided_slice %0 {offsets = [0, 0, 0], sizes = [4, 8, 8], strides = [1, 1, 1]} : vector<4x8x48xf32> to vector<4x8x8xf32>
    %3 = arith.truncf %2 : vector<4x8x8xf32> to vector<4x8x8xbf16>
    %4 = vector.extract_strided_slice %0 {offsets = [0, 0, 16], sizes = [4, 8, 8], strides = [1, 1, 1]} : vector<4x8x48xf32> to vector<4x8x8xf32>
    %5 = arith.truncf %4 : vector<4x8x8xf32> to vector<4x8x8xbf16>
    %6 = vector.extract_strided_slice %0 {offsets = [0, 0, 32], sizes = [4, 8, 8], strides = [1, 1, 1]} : vector<4x8x48xf32> to vector<4x8x8xf32>
    %7 = arith.truncf %6 : vector<4x8x8xf32> to vector<4x8x8xbf16>
    "tpu.trace_start"() <{level = 10 : i32, message = "bqc,bkc->bqk"}> : () -> ()
    %cst = arith.constant dense<0.000000e+00> : vector<4x8x8xf32>
    %8 = tpu.matmul %3, %5, %cst {dimension_numbers = #tpu.dot_dimension_numbers<[2], [2], [1], [1], [0, 0, 0, 1, 1, 1], [0], [0]>} : vector<4x8x8xbf16>, vector<4x8x8xbf16>, vector<4x8x8xf32> -> vector<4x8x8xf32>
    "tpu.trace_stop"() : () -> ()
    %9 = vector.extract_strided_slice %1 {offsets = [0, 0, 0, 0], sizes = [4, 1, 8, 8], strides = [1, 1, 1, 1]} : vector<4x2x8x8xf32> to vector<4x1x8x8xf32>
    %10 = vector.shape_cast %9 : vector<4x1x8x8xf32> to vector<4x8x8xf32>
    %11 = arith.addf %8, %10 : vector<4x8x8xf32>
    %cst_6 = arith.constant dense<0xFF800000> : vector<4x8xf32>
    %12 = vector.multi_reduction <maximumf>, %11, %cst_6 [2] : vector<4x8x8xf32> to vector<4x8xf32>
    %13 = vector.shape_cast %12 : vector<4x8xf32> to vector<4x8x1xf32>
    %14 = vector.broadcast %13 : vector<4x8x1xf32> to vector<4x8x8xf32>
    %15 = arith.subf %11, %14 : vector<4x8x8xf32>
    %16 = math.exp %15 : vector<4x8x8xf32>
    %cst_7 = arith.constant dense<0.000000e+00> : vector<4x8xf32>
    %17 = vector.multi_reduction <add>, %16, %cst_7 [2] : vector<4x8x8xf32> to vector<4x8xf32>
    %18 = vector.shape_cast %17 : vector<4x8xf32> to vector<4x8x1xf32>
    %19 = tpu.reciprocal %18 {approx = true} : vector<4x8x1xf32> -> vector<4x8x1xf32>
    %20 = vector.broadcast %19 : vector<4x8x1xf32> to vector<4x8x8xf32>
    %21 = arith.mulf %16, %20 : vector<4x8x8xf32>
    %22 = arith.truncf %21 : vector<4x8x8xf32> to vector<4x8x8xbf16>
    "tpu.trace_start"() <{level = 10 : i32, message = "bqk,bkc->bqc"}> : () -> ()
    %cst_8 = arith.constant dense<0.000000e+00> : vector<4x8x8xf32>
    %23 = tpu.matmul %22, %7, %cst_8 {dimension_numbers = #tpu.dot_dimension_numbers<[2], [1], [1], [2], [0, 0, 0, 1, 1, 2], [0], [0]>} : vector<4x8x8xbf16>, vector<4x8x8xbf16>, vector<4x8x8xf32> -> vector<4x8x8xf32>
    "tpu.trace_stop"() : () -> ()
    %24 = vector.extract_strided_slice %0 {offsets = [0, 0, 8], sizes = [4, 8, 8], strides = [1, 1, 1]} : vector<4x8x48xf32> to vector<4x8x8xf32>
    %25 = arith.truncf %24 : vector<4x8x8xf32> to vector<4x8x8xbf16>
    %26 = vector.extract_strided_slice %0 {offsets = [0, 0, 24], sizes = [4, 8, 8], strides = [1, 1, 1]} : vector<4x8x48xf32> to vector<4x8x8xf32>
    %27 = arith.truncf %26 : vector<4x8x8xf32> to vector<4x8x8xbf16>
    %28 = vector.extract_strided_slice %0 {offsets = [0, 0, 40], sizes = [4, 8, 8], strides = [1, 1, 1]} : vector<4x8x48xf32> to vector<4x8x8xf32>
    %29 = arith.truncf %28 : vector<4x8x8xf32> to vector<4x8x8xbf16>
    "tpu.trace_start"() <{level = 10 : i32, message = "bqc,bkc->bqk"}> : () -> ()
    %cst_9 = arith.constant dense<0.000000e+00> : vector<4x8x8xf32>
    %30 = tpu.matmul %25, %27, %cst_9 {dimension_numbers = #tpu.dot_dimension_numbers<[2], [2], [1], [1], [0, 0, 0, 1, 1, 1], [0], [0]>} : vector<4x8x8xbf16>, vector<4x8x8xbf16>, vector<4x8x8xf32> -> vector<4x8x8xf32>
    "tpu.trace_stop"() : () -> ()
    %31 = vector.extract_strided_slice %1 {offsets = [0, 1, 0, 0], sizes = [4, 1, 8, 8], strides = [1, 1, 1, 1]} : vector<4x2x8x8xf32> to vector<4x1x8x8xf32>
    %32 = vector.shape_cast %31 : vector<4x1x8x8xf32> to vector<4x8x8xf32>
    %33 = arith.addf %30, %32 : vector<4x8x8xf32>
    %cst_10 = arith.constant dense<0xFF800000> : vector<4x8xf32>
    %34 = vector.multi_reduction <maximumf>, %33, %cst_10 [2] : vector<4x8x8xf32> to vector<4x8xf32>
    %35 = vector.shape_cast %34 : vector<4x8xf32> to vector<4x8x1xf32>
    %36 = vector.broadcast %35 : vector<4x8x1xf32> to vector<4x8x8xf32>
    %37 = arith.subf %33, %36 : vector<4x8x8xf32>
    %38 = math.exp %37 : vector<4x8x8xf32>
    %cst_11 = arith.constant dense<0.000000e+00> : vector<4x8xf32>
    %39 = vector.multi_reduction <add>, %38, %cst_11 [2] : vector<4x8x8xf32> to vector<4x8xf32>
    %40 = vector.shape_cast %39 : vector<4x8xf32> to vector<4x8x1xf32>
    %41 = tpu.reciprocal %40 {approx = true} : vector<4x8x1xf32> -> vector<4x8x1xf32>
    %42 = vector.broadcast %41 : vector<4x8x1xf32> to vector<4x8x8xf32>
    %43 = arith.mulf %38, %42 : vector<4x8x8xf32>
    %44 = arith.truncf %43 : vector<4x8x8xf32> to vector<4x8x8xbf16>
    "tpu.trace_start"() <{level = 10 : i32, message = "bqk,bkc->bqc"}> : () -> ()
    %cst_12 = arith.constant dense<0.000000e+00> : vector<4x8x8xf32>
    %45 = tpu.matmul %44, %29, %cst_12 {dimension_numbers = #tpu.dot_dimension_numbers<[2], [1], [1], [2], [0, 0, 0, 1, 1, 2], [0], [0]>} : vector<4x8x8xbf16>, vector<4x8x8xbf16>, vector<4x8x8xf32> -> vector<4x8x8xf32>
    "tpu.trace_stop"() : () -> ()
    %46 = tpu.concatenate %23, %45 in 2 : vector<4x8x8xf32>, vector<4x8x8xf32> -> vector<4x8x16xf32>
    %c0_13 = arith.constant 0 : index
    %c0_14 = arith.constant 0 : index
    %c0_15 = arith.constant 0 : index
    %47 = vector.load %arg3[%c0_13, %c0_14, %c0_15] : memref<4x8x16xf32, #tpu.memory_space<vmem>>, vector<4x8x16xf32>
    tpu.vector_store %arg3[%c0_13, %c0_14, %c0_15], %46 {strides = array<i32>} : memref<4x8x16xf32, #tpu.memory_space<vmem>>, vector<4x8x16xf32>,
    return
  }
  func.func @transform_0(%arg0: i32) -> (i32, i32, i32) {
    %c0_i32 = arith.constant 0 : i32
    %c0_i32_0 = arith.constant 0 : i32
    %c0_i32_1 = arith.constant 0 : i32
    return %arg0, %c0_i32, %c0_i32_0 : i32, i32, i32
  }
  func.func @transform_1(%arg0: i32) -> (i32, i32, i32, i32) {
    %c0_i32 = arith.constant 0 : i32
    %c0_i32_0 = arith.constant 0 : i32
    %c0_i32_1 = arith.constant 0 : i32
    %c0_i32_2 = arith.constant 0 : i32
    return %arg0, %c0_i32, %c0_i32_0, %c0_i32_1 : i32, i32, i32, i32
  }
  func.func @transform_2(%arg0: i32) -> (i32, i32, i32) {
    %c0_i32 = arith.constant 0 : i32
    %c0_i32_0 = arith.constant 0 : i32
    %c0_i32_1 = arith.constant 0 : i32
    return %arg0, %c0_i32, %c0_i32_0 : i32, i32, i32
  }
}

module attributes {stable_mosaic.version = 11 : i64} {
  func.func @_mlp_kernel(%arg0: i32, %arg1: memref<24x16xf32, #tpu.memory_space<vmem>>, %arg2: memref<1x16xf32, #tpu.memory_space<vmem>>, %arg3: memref<1x16xf32, #tpu.memory_space<vmem>>, %arg4: memref<16x64xbf16, #tpu.memory_space<vmem>>, %arg5: memref<1x64xf32, #tpu.memory_space<vmem>>, %arg6: memref<64x16xbf16, #tpu.memory_space<vmem>>, %arg7: memref<1x16xf32, #tpu.memory_space<vmem>>, %arg8: memref<24x16xf32, #tpu.memory_space<vmem>>) attributes {dimension_semantics = [#tpu.dimension_semantics<parallel>], iteration_bounds = array<i64: 1>, scalar_prefetch = 0 : i64, scratch_operands = 0 : i64, tpu.core_type = #tpu.core_type<tc>, window_params = [{transform_indices = @transform_0, window_bounds = array<i64: 24, 16>}, {pipeline_mode = #tpu.pipeline_mode<synchronous>, transform_indices = @transform_1, window_bounds = array<i64: 1, 16>}, {pipeline_mode = #tpu.pipeline_mode<synchronous>, transform_indices = @transform_2, window_bounds = array<i64: 1, 16>}, {pipeline_mode = #tpu.pipeline_mode<synchronous>, transform_indices = @transform_3, window_bounds = array<i64: 16, 64>}, {pipeline_mode = #tpu.pipeline_mode<synchronous>, transform_indices = @transform_4, window_bounds = array<i64: 1, 64>}, {pipeline_mode = #tpu.pipeline_mode<synchronous>, transform_indices = @transform_5, window_bounds = array<i64: 64, 16>}, {pipeline_mode = #tpu.pipeline_mode<synchronous>, transform_indices = @transform_6, window_bounds = array<i64: 1, 16>}, {transform_indices = @transform_7, window_bounds = array<i64: 24, 16>}]} {
    %c0 = arith.constant 0 : index
    %c0_0 = arith.constant 0 : index
    %0 = vector.load %arg1[%c0, %c0_0] : memref<24x16xf32, #tpu.memory_space<vmem>>, vector<24x16xf32>
    %cst = arith.constant dense<0.000000e+00> : vector<24xf32>
    %1 = vector.multi_reduction <add>, %0, %cst [1] : vector<24x16xf32> to vector<24xf32>
    %2 = vector.shape_cast %1 : vector<24xf32> to vector<24x1xf32>
    %cst_1 = arith.constant 1.600000e+01 : f32
    %3 = vector.broadcast %cst_1 : f32 to vector<24x1xf32>
    %4 = arith.divf %2, %3 : vector<24x1xf32>
    %5 = vector.broadcast %4 : vector<24x1xf32> to vector<24x16xf32>
    %6 = arith.subf %0, %5 : vector<24x16xf32>
    %7 = arith.mulf %6, %6 : vector<24x16xf32>
    %cst_2 = arith.constant dense<0.000000e+00> : vector<24xf32>
    %8 = vector.multi_reduction <add>, %7, %cst_2 [1] : vector<24x16xf32> to vector<24xf32>
    %9 = vector.shape_cast %8 : vector<24xf32> to vector<24x1xf32>
    %cst_3 = arith.constant 1.600000e+01 : f32
    %10 = vector.broadcast %cst_3 : f32 to vector<24x1xf32>
    %11 = arith.divf %9, %10 : vector<24x1xf32>
    %cst_4 = arith.constant 9.99999974E-6 : f32
    %12 = vector.broadcast %cst_4 : f32 to vector<24x1xf32>
    %13 = arith.addf %11, %12 : vector<24x1xf32>
    %14 = math.rsqrt %13 : vector<24x1xf32>
    %15 = vector.broadcast %14 : vector<24x1xf32> to vector<24x16xf32>
    %16 = arith.mulf %6, %15 : vector<24x16xf32>
    %c0_5 = arith.constant 0 : index
    %c0_6 = arith.constant 0 : index
    %17 = vector.load %arg2[%c0_5, %c0_6] : memref<1x16xf32, #tpu.memory_space<vmem>>, vector<1x16xf32>
    %18 = vector.broadcast %17 : vector<1x16xf32> to vector<24x16xf32>
    %19 = arith.mulf %16, %18 : vector<24x16xf32>
    %c0_7 = arith.constant 0 : index
    %c0_8 = arith.constant 0 : index
    %20 = vector.load %arg3[%c0_7, %c0_8] : memref<1x16xf32, #tpu.memory_space<vmem>>, vector<1x16xf32>
    %21 = vector.broadcast %20 : vector<1x16xf32> to vector<24x16xf32>
    %22 = arith.addf %19, %21 : vector<24x16xf32>
    %23 = arith.truncf %22 : vector<24x16xf32> to vector<24x16xbf16>
    %c0_9 = arith.constant 0 : index
    %c0_10 = arith.constant 0 : index
    %24 = vector.load %arg4[%c0_9, %c0_10] : memref<16x64xbf16, #tpu.memory_space<vmem>>, vector<16x64xbf16>
    %cst_11 = arith.constant dense<0.000000e+00> : vector<24x64xf32>
    %25 = tpu.matmul %23, %24, %cst_11 {dimension_numbers = #tpu.dot_dimension_numbers<[1], [0], [0], [1], [0, 0, 1, 1], [], []>} : vector<24x16xbf16>, vector<16x64xbf16>, vector<24x64xf32> -> vector<24x64xf32>
    %c0_12 = arith.constant 0 : index
    %c0_13 = arith.constant 0 : index
    %26 = vector.load %arg5[%c0_12, %c0_13] : memref<1x64xf32, #tpu.memory_space<vmem>>, vector<1x64xf32>
    %27 = vector.broadcast %26 : vector<1x64xf32> to vector<24x64xf32>
    %28 = arith.addf %25, %27 : vector<24x64xf32>
    %29 = arith.mulf %28, %28 : vector<24x64xf32>
    %30 = arith.mulf %28, %29 : vector<24x64xf32>
    %cst_14 = arith.constant 4.471500e-02 : f32
    %31 = vector.broadcast %cst_14 : f32 to vector<24x64xf32>
    %32 = arith.mulf %31, %30 : vector<24x64xf32>
    %33 = arith.addf %28, %32 : vector<24x64xf32>
    %cst_15 = arith.constant 0.797884583 : f32
    %34 = vector.broadcast %cst_15 : f32 to vector<24x64xf32>
    %35 = arith.mulf %34, %33 : vector<24x64xf32>
    %36 = math.tanh %35 : vector<24x64xf32>
    %cst_16 = arith.constant 1.000000e+00 : f32
    %37 = vector.broadcast %cst_16 : f32 to vector<24x64xf32>
    %38 = arith.addf %37, %36 : vector<24x64xf32>
    %cst_17 = arith.constant 5.000000e-01 : f32
    %39 = vector.broadcast %cst_17 : f32 to vector<24x64xf32>
    %40 = arith.mulf %39, %38 : vector<24x64xf32>
    %41 = arith.mulf %28, %40 : vector<24x64xf32>
    %42 = arith.truncf %41 : vector<24x64xf32> to vector<24x64xbf16>
    %c0_18 = arith.constant 0 : index
    %c0_19 = arith.constant 0 : index
    %43 = vector.load %arg6[%c0_18, %c0_19] : memref<64x16xbf16, #tpu.memory_space<vmem>>, vector<64x16xbf16>
    %cst_20 = arith.constant dense<0.000000e+00> : vector<24x16xf32>
    %44 = tpu.matmul %42, %43, %cst_20 {dimension_numbers = #tpu.dot_dimension_numbers<[1], [0], [0], [1], [0, 0, 1, 1], [], []>} : vector<24x64xbf16>, vector<64x16xbf16>, vector<24x16xf32> -> vector<24x16xf32>
    %c0_21 = arith.constant 0 : index
    %c0_22 = arith.constant 0 : index
    %45 = vector.load %arg7[%c0_21, %c0_22] : memref<1x16xf32, #tpu.memory_space<vmem>>, vector<1x16xf32>
    %46 = vector.broadcast %45 : vector<1x16xf32> to vector<24x16xf32>
    %47 = arith.addf %44, %46 : vector<24x16xf32>
    %48 = arith.addf %0, %47 : vector<24x16xf32>
    %c0_23 = arith.constant 0 : index
    %c0_24 = arith.constant 0 : index
    %49 = vector.load %arg8[%c0_23, %c0_24] : memref<24x16xf32, #tpu.memory_space<vmem>>, vector<24x16xf32>
    tpu.vector_store %arg8[%c0_23, %c0_24], %48 {strides = array<i32>} : memref<24x16xf32, #tpu.memory_space<vmem>>, vector<24x16xf32>,
    return
  }
  func.func @transform_0(%arg0: i32) -> (i32, i32) {
    %c0_i32 = arith.constant 0 : i32
    %c0_i32_0 = arith.constant 0 : i32
    return %arg0, %c0_i32 : i32, i32
  }
  func.func @transform_1(%arg0: i32) -> (i32, i32) {
    %c0_i32 = arith.constant 0 : i32
    %c0_i32_0 = arith.constant 0 : i32
    %c0_i32_1 = arith.constant 0 : i32
    return %c0_i32, %c0_i32_0 : i32, i32
  }
  func.func @transform_2(%arg0: i32) -> (i32, i32) {
    %c0_i32 = arith.constant 0 : i32
    %c0_i32_0 = arith.constant 0 : i32
    %c0_i32_1 = arith.constant 0 : i32
    return %c0_i32, %c0_i32_0 : i32, i32
  }
  func.func @transform_3(%arg0: i32) -> (i32, i32) {
    %c0_i32 = arith.constant 0 : i32
    %c0_i32_0 = arith.constant 0 : i32
    %c0_i32_1 = arith.constant 0 : i32
    return %c0_i32, %c0_i32_0 : i32, i32
  }
  func.func @transform_4(%arg0: i32) -> (i32, i32) {
    %c0_i32 = arith.constant 0 : i32
    %c0_i32_0 = arith.constant 0 : i32
    %c0_i32_1 = arith.constant 0 : i32
    return %c0_i32, %c0_i32_0 : i32, i32
  }
  func.func @transform_5(%arg0: i32) -> (i32, i32) {
    %c0_i32 = arith.constant 0 : i32
    %c0_i32_0 = arith.constant 0 : i32
    %c0_i32_1 = arith.constant 0 : i32
    return %c0_i32, %c0_i32_0 : i32, i32
  }
  func.func @transform_6(%arg0: i32) -> (i32, i32) {
    %c0_i32 = arith.constant 0 : i32
    %c0_i32_0 = arith.constant 0 : i32
    %c0_i32_1 = arith.constant 0 : i32
    return %c0_i32, %c0_i32_0 : i32, i32
  }
  func.func @transform_7(%arg0: i32) -> (i32, i32) {
    %c0_i32 = arith.constant 0 : i32
    %c0_i32_0 = arith.constant 0 : i32
    return %arg0, %c0_i32 : i32, i32
  }
}

</mosaic_0001>

<bundles_post_ra>
// kernel: octformer_stage_forward.10
= control target key start
LH: loop header
LB: loop body
LE: loop exit
PB: predicated region body
PF: predicated region fallthrough
CT: control target
= control target key end

     0   :  { %vm447_vm0 = vcmask 130048   ;;  %s940_s0 = inlined_call_operand.vmem [shape: f32[27,23,16], index: 0, kind: input, shape index: {}]   ;;  %s941_s2 = inlined_call_operand.vmem [shape: f32[27,16], index: 2, kind: input, shape index: {}]   ;;  %s942_s3 = inlined_call_operand.vmem [shape: f32[1,16], index: 3, kind: input, shape index: {}]   ;;  %s943_s4 = inlined_call_operand.vmem [shape: f32[1,16], index: 4, kind: input, shape index: {}]   ;;  %s944_s1 = inlined_call_operand.vmem [shape: f32[23,16], index: 1, kind: input, shape index: {}]   ;;  %s945_s5 = inlined_call_operand.vmem [shape: f32[23,16], index: 5, kind: output, shape index: {}]  }
   0x1   :  { %v20_v0 = vld [vmem:[%s940_s0] sm:$0xff]  ;;  %v21_v1 = vld [vmem:[%s940_s0 + $0x8] sm:$0xff]  ;;  %v22_v2 = vld [vmem:[%s940_s0 + $0x10] sm:$0xff] }
   0x2   :  { %v455_v3 = vld [vmem:[%s941_s2] ss:$0 sm:$0xff]  ;;  %v456_v4 = vld [vmem:[%s940_s0 + $0x18] sm:$0xff]  ;;  %v458_v9 = vld [vmem:[%s940_s0 + $0x28] sm:$0xff] }
   0x3   :  { %v457_v5 = vld [vmem:[%s940_s0 + $0x20] sm:$0xff]  ;;  %v28_v6 = vmul.f32 %v455_v3, %v20_v0  ;;  %v29_v7 = vmul.f32 %v455_v3, %v21_v1  ;;  %v30_v8 = vmul.f32 %v455_v3, %v22_v2  ;;  %v460_v11 = vld [vmem:[%s940_s0 + $0x30] sm:$0xff]  ;;  %v461_v15 = vld [vmem:[%s940_s0 + $0x38] sm:$0xff] }
   0x4   :  { %v459_v10 = vld [vmem:[%s941_s2 + $0x1] ss:$0 sm:$0xff]  ;;  %v463_v17 = vld [vmem:[%s941_s2 + $0x2] ss:$0 sm:$0xff]  ;;  %v464_v21 = vld [vmem:[%s940_s0 + $0x48] sm:$0xff] }
   0x5   :  { %v40_v12 = vmul.f32 %v459_v10, %v456_v4  ;;  %v41_v13 = vmul.f32 %v459_v10, %v457_v5  ;;  %v42_v14 = vmul.f32 %v459_v10, %v458_v9  ;;  %v462_v16 = vld [vmem:[%s940_s0 + $0x40] sm:$0xff]  ;;  %v55_v18 = vmul.f32 %v463_v17, %v460_v11  ;;  %v465_v22 = vld [vmem:[%s940_s0 + $0x50] sm:$0xff]  ;;  %v466_v23 = vld [vmem:[%s940_s0 + $0x58] sm:$0xff] }
   0x6   :  { %v56_v19 = vmul.f32 %v463_v17, %v461_v15  ;;  %v57_v20 = vmul.f32 %v463_v17, %v462_v16  ;;  %v467_v27 = vld [vmem:[%s941_s2 + $0x3] ss:$0 sm:$0xff]  ;;  %v469_v29 = vld [vmem:[%s940_s0 + $0x68] sm:$0xff]  ;;  %v470_v33 = vld [vmem:[%s940_s0 + $0x70] sm:$0xff] }
   0x7   :  { %v43_v24 = vadd.f32 %v40_v12, %v28_v6  ;;  %v44_v25 = vadd.f32 %v41_v13, %v29_v7  ;;  %v45_v26 = vadd.f32 %v42_v14, %v30_v8  ;;  %v468_v28 = vld [vmem:[%s940_s0 + $0x60] sm:$0xff]  ;;  %v70_v30 = vmul.f32 %v467_v27, %v464_v21  ;;  %v472_v35 = vld [vmem:[%s940_s0 + $0x78] sm:$0xff]  ;;  %v474_v41 = vld [vmem:[%s940_s0 + $0x88] sm:$0xff] }
   0x8   :  { %v71_v31 = vmul.f32 %v467_v27, %v465_v22  ;;  %v72_v32 = vmul.f32 %v467_v27, %v466_v23  ;;  %v471_v34 = vld [vmem:[%s941_s2 + $0x4] ss:$0 sm:$0xff]  ;;  %v475_v42 = vld [vmem:[%s941_s2 + $0x5] ss:$0 sm:$0xff]  ;;  %v476_v47 = vld [vmem:[%s940_s0 + $0x90] sm:$0xff] }
   0x9   :  { %v58_v36 = vadd.f32 %v55_v18, %v43_v24  ;;  %v59_v37 = vadd.f32 %v56_v19, %v44_v25  ;;  %v60_v38 = vadd.f32 %v57_v20, %v45_v26  ;;  %v85_v39 = vmul.f32 %v471_v34, %v468_v28  ;;  %v473_v40 = vld [vmem:[%s940_s0 + $0x80] sm:$0xff]  ;;  %v477_v48 = vld [vmem:[%s940_s0 + $0x98] sm:$0xff]  ;;  %v480_v55 = vld [vmem:[%s940_s0 + $0xa8] sm:$0xff] }
   0xa   :  { %v86_v43 = vmul.f32 %v471_v34, %v469_v29  ;;  %v87_v44 = vmul.f32 %v471_v34, %v470_v33  ;;  %v100_v45 = vmul.f32 %v475_v42, %v472_v35  ;;  %v101_v46 = vmul.f32 %v475_v42, %v473_v40  ;;  %v478_v49 = vld [vmem:[%s940_s0 + $0xa0] sm:$0xff]  ;;  %v481_v56 = vld [vmem:[%s940_s0 + $0xb0] sm:$0xff]  ;;  %v482_v59 = vld [vmem:[%s940_s0 + $0xb8] sm:$0xff] }
   0xb   :  { %v73_v50 = vadd.f32 %v70_v30, %v58_v36  ;;  %v74_v51 = vadd.f32 %v71_v31, %v59_v37  ;;  %v75_v52 = vadd.f32 %v72_v32, %v60_v38  ;;  %v102_v53 = vmul.f32 %v475_v42, %v474_v41  ;;  %v479_v54 = vld [vmem:[%s941_s2 + $0x6] ss:$0 sm:$0xff]  ;;  %v483_v60 = vld [vmem:[%s941_s2 + $0x7] ss:$0 sm:$0xff]  ;;  %v485_v2 = vld [vmem:[%s940_s0 + $0xc8] sm:$0xff] }
   0xc   :  { %v115_v57 = vmul.f32 %v479_v54, %v476_v47  ;;  %v116_v58 = vmul.f32 %v479_v54, %v477_v48  ;;  %v117_v0 = vmul.f32 %v479_v54, %v478_v49  ;;  %v484_v1 = vld [vmem:[%s940_s0 + $0xc0] sm:$0xff]  ;;  %v487_v3 = vld [vmem:[%s941_s2 + $0x8] ss:$0 sm:$0xff]  ;;  %v130_v4 = vmul.f32 %v483_v60, %v480_v55  ;;  %v486_v6 = vld [vmem:[%s940_s0 + $0xd0] sm:$0xff] }
   0xd   :  { %v88_v61 = vadd.f32 %v85_v39, %v73_v50  ;;  %v89_v62 = vadd.f32 %v86_v43, %v74_v51  ;;  %v90_v63 = vadd.f32 %v87_v44, %v75_v52  ;;  %v131_v5 = vmul.f32 %v483_v60, %v481_v56  ;;  %v488_v11 = vld [vmem:[%s940_s0 + $0xd8] sm:$0xff]  ;;  %v489_v12 = vld [vmem:[%s940_s0 + $0xe0] sm:$0xff]  ;;  %v491_v13 = vld [vmem:[%s941_s2 + $0x9] ss:$0 sm:$0xff] }
   0xe   :  { %v132_v10 = vmul.f32 %v483_v60, %v482_v59  ;;  %v145_v14 = vmul.f32 %v487_v3, %v484_v1  ;;  %v146_v15 = vmul.f32 %v487_v3, %v485_v2  ;;  %v490_v16 = vld [vmem:[%s940_s0 + $0xe8] sm:$0xff]  ;;  %v147_v20 = vmul.f32 %v487_v3, %v486_v6  ;;  %v492_v21 = vld [vmem:[%s940_s0 + $0xf0] sm:$0xff]  ;;  %v493_v22 = vld [vmem:[%s940_s0 + $0xf8] sm:$0xff] }
   0xf   :  { %v103_v7 = vadd.f32 %v100_v45, %v88_v61  ;;  %v104_v8 = vadd.f32 %v101_v46, %v89_v62  ;;  %v105_v9 = vadd.f32 %v102_v53, %v90_v63  ;;  %v495_v23 = vld [vmem:[%s941_s2 + $0xa] ss:$0 sm:$0xff]  ;;  %v160_v24 = vmul.f32 %v491_v13, %v488_v11  ;;  %v494_v26 = vld [vmem:[%s940_s0 + $0x100] sm:$0xff]  ;;  %v497_v32 = vld [vmem:[%s940_s0 + $0x110] sm:$0xff] }
  0x10   :  { %v161_v25 = vmul.f32 %v491_v13, %v489_v12  ;;  %v162_v30 = vmul.f32 %v491_v13, %v490_v16  ;;  %v496_v31 = vld [vmem:[%s940_s0 + $0x108] sm:$0xff]  ;;  %v175_v34 = vmul.f32 %v495_v23, %v492_v21  ;;  %v176_v35 = vmul.f32 %v495_v23, %v493_v22  ;;  %v498_v36 = vld [vmem:[%s940_s0 + $0x118] sm:$0xff]  ;;  %v500_v41 = vld [vmem:[%s940_s0 + $0x120] sm:$0xff] }
  0x11   :  { %v118_v17 = vadd.f32 %v115_v57, %v103_v7  ;;  %v119_v18 = vadd.f32 %v116_v58, %v104_v8  ;;  %v120_v19 = vadd.f32 %v117_v0, %v105_v9  ;;  %v499_v33 = vld [vmem:[%s941_s2 + $0xb] ss:$0 sm:$0xff]  ;;  %v177_v40 = vmul.f32 %v495_v23, %v494_v26  ;;  %v503_v43 = vld [vmem:[%s941_s2 + $0xc] ss:$0 sm:$0xff]  ;;  %v502_v46 = vld [vmem:[%s940_s0 + $0x130] sm:$0xff] }
  0x12   :  { %v501_v42 = vld [vmem:[%s940_s0 + $0x128] sm:$0xff]  ;;  %v190_v44 = vmul.f32 %v499_v33, %v496_v31  ;;  %v191_v45 = vmul.f32 %v499_v33, %v497_v32  ;;  %v192_v50 = vmul.f32 %v499_v33, %v498_v36  ;;  %v504_v51 = vld [vmem:[%s940_s0 + $0x138] sm:$0xff]  ;;  %v505_v52 = vld [vmem:[%s940_s0 + $0x140] sm:$0xff]  ;;  %v205_v54 = vmul.f32 %v503_v43, %v500_v41 }
  0x13   :  { %v133_v27 = vadd.f32 %v130_v4, %v118_v17  ;;  %v134_v28 = vadd.f32 %v131_v5, %v119_v18  ;;  %v135_v29 = vadd.f32 %v132_v10, %v120_v19  ;;  %v507_v53 = vld [vmem:[%s941_s2 + $0xd] ss:$0 sm:$0xff]  ;;  %v206_v55 = vmul.f32 %v503_v43, %v501_v42  ;;  %v508_v61 = vld [vmem:[%s940_s0 + $0x150] sm:$0xff]  ;;  %v509_v62 = vld [vmem:[%s940_s0 + $0x158] sm:$0xff] }
  0x14   :  { %v506_v56 = vld [vmem:[%s940_s0 + $0x148] sm:$0xff]  ;;  %v207_v60 = vmul.f32 %v503_v43, %v502_v46  ;;  %v220_v0 = vmul.f32 %v507_v53, %v504_v51  ;;  %v221_v1 = vmul.f32 %v507_v53, %v505_v52  ;;  %v510_v2 = vld [vmem:[%s940_s0 + $0x160] sm:$0xff]  ;;  %v513_v8 = vld [vmem:[%s940_s0 + $0x170] sm:$0xff] }
  0x15   :  { %v148_v37 = vadd.f32 %v145_v14, %v133_v27  ;;  %v149_v38 = vadd.f32 %v146_v15, %v134_v28  ;;  %v150_v39 = vadd.f32 %v147_v20, %v135_v29  ;;  %v511_v63 = vld [vmem:[%s941_s2 + $0xe] ss:$0 sm:$0xff]  ;;  %v222_v6 = vmul.f32 %v507_v53, %v506_v56  ;;  %v515_v9 = vld [vmem:[%s941_s2 + $0xf] ss:$0 sm:$0xff]  ;;  %v514_v12 = vld [vmem:[%s940_s0 + $0x178] sm:$0xff] }
  0x16   :  { %v512_v7 = vld [vmem:[%s940_s0 + $0x168] sm:$0xff]  ;;  %v235_v10 = vmul.f32 %v511_v63, %v508_v61  ;;  %v236_v11 = vmul.f32 %v511_v63, %v509_v62  ;;  %v237_v16 = vmul.f32 %v511_v63, %v510_v2  ;;  %v516_v17 = vld [vmem:[%s940_s0 + $0x180] sm:$0xff]  ;;  %v519_v19 = vld [vmem:[%s941_s2 + $0x10] ss:$0 sm:$0xff]  ;;  %v251_v21 = vmul.f32 %v515_v9, %v513_v8 }
  0x17   :  { %v163_v47 = vadd.f32 %v160_v24, %v148_v37  ;;  %v164_v48 = vadd.f32 %v161_v25, %v149_v38  ;;  %v165_v49 = vadd.f32 %v162_v30, %v150_v39  ;;  %v517_v18 = vld [vmem:[%s940_s0 + $0x188] sm:$0xff]  ;;  %v250_v20 = vmul.f32 %v515_v9, %v512_v7  ;;  %v518_v22 = vld [vmem:[%s940_s0 + $0x190] sm:$0xff]  ;;  %v520_v27 = vld [vmem:[%s940_s0 + $0x198] sm:$0xff] }
  0x18   :  { %v252_v26 = vmul.f32 %v515_v9, %v514_v12  ;;  %v521_v28 = vld [vmem:[%s940_s0 + $0x1a0] sm:$0xff]  ;;  %v523_v29 = vld [vmem:[%s941_s2 + $0x11] ss:$0 sm:$0xff]  ;;  %v265_v30 = vmul.f32 %v519_v19, %v516_v17  ;;  %v266_v31 = vmul.f32 %v519_v19, %v517_v18  ;;  %v522_v32 = vld [vmem:[%s940_s0 + $0x1a8] sm:$0xff]  ;;  %v267_v36 = vmul.f32 %v519_v19, %v518_v22 }
  0x19   :  { %v178_v57 = vadd.f32 %v175_v34, %v163_v47  ;;  %v179_v58 = vadd.f32 %v176_v35, %v164_v48  ;;  %v180_v59 = vadd.f32 %v177_v40, %v165_v49  ;;  %v524_v37 = vld [vmem:[%s940_s0 + $0x1b0] sm:$0xff]  ;;  %v525_v38 = vld [vmem:[%s940_s0 + $0x1b8] sm:$0xff]  ;;  %v280_v40 = vmul.f32 %v523_v29, %v520_v27  ;;  %v526_v42 = vld [vmem:[%s940_s0 + $0x1c0] sm:$0xff] }
  0x1a   :  { %v527_v39 = vld [vmem:[%s941_s2 + $0x12] ss:$0 sm:$0xff]  ;;  %v281_v41 = vmul.f32 %v523_v29, %v521_v28  ;;  %v282_v46 = vmul.f32 %v523_v29, %v522_v32  ;;  %v528_v47 = vld [vmem:[%s940_s0 + $0x1c8] sm:$0xff]  ;;  %v531_v49 = vld [vmem:[%s941_s2 + $0x13] ss:$0 sm:$0xff] }
  0x1b   :  { %v193_v3 = vadd.f32 %v190_v44, %v178_v57  ;;  %v194_v4 = vadd.f32 %v191_v45, %v179_v58  ;;  %v195_v5 = vadd.f32 %v192_v50, %v180_v59  ;;  %v529_v48 = vld [vmem:[%s940_s0 + $0x1d0] sm:$0xff]  ;;  %v295_v50 = vmul.f32 %v527_v39, %v524_v37  ;;  %v530_v52 = vld [vmem:[%s940_s0 + $0x1d8] sm:$0xff]  ;;  %v532_v57 = vld [vmem:[%s940_s0 + $0x1e0] sm:$0xff] }
  0x1c   :  { %v296_v51 = vmul.f32 %v527_v39, %v525_v38  ;;  %v297_v56 = vmul.f32 %v527_v39, %v526_v42  ;;  %v533_v58 = vld [vmem:[%s940_s0 + $0x1e8] sm:$0xff]  ;;  %v535_v59 = vld [vmem:[%s941_s2 + $0x14] ss:$0 sm:$0xff]  ;;  %v311_v61 = vmul.f32 %v531_v49, %v529_v48  ;;  %v312_v2 = vmul.f32 %v531_v49, %v530_v52  ;;  %v542_v18 = vld [vmem:[%s940_s0 + $0x220] sm:$0xff] }
  0x1d   :  { %v208_v13 = vadd.f32 %v205_v54, %v193_v3  ;;  %v209_v14 = vadd.f32 %v206_v55, %v194_v4  ;;  %v210_v15 = vadd.f32 %v207_v60, %v195_v5  ;;  %v310_v60 = vmul.f32 %v531_v49, %v528_v47  ;;  %v534_v62 = vld [vmem:[%s940_s0 + $0x1f0] sm:$0xff]  ;;  %v536_v3 = vld [vmem:[%s940_s0 + $0x1f8] sm:$0xff]  ;;  %v537_v4 = vld [vmem:[%s940_s0 + $0x200] sm:$0xff] }
  0x1e   :  { %v539_v5 = vld [vmem:[%s941_s2 + $0x15] ss:$0 sm:$0xff]  ;;  %v326_v7 = vmul.f32 %v535_v59, %v533_v58  ;;  %v538_v8 = vld [vmem:[%s940_s0 + $0x208] sm:$0xff]  ;;  %v327_v12 = vmul.f32 %v535_v59, %v534_v62  ;;  %v546_v28 = vld [vmem:[%s940_s0 + $0x238] sm:$0xff] }
  0x1f   :  { %v223_v23 = vadd.f32 %v220_v0, %v208_v13  ;;  %v224_v24 = vadd.f32 %v221_v1, %v209_v14  ;;  %v225_v25 = vadd.f32 %v222_v6, %v210_v15  ;;  %v325_v6 = vmul.f32 %v535_v59, %v532_v57  ;;  %v540_v13 = vld [vmem:[%s940_s0 + $0x210] sm:$0xff]  ;;  %v541_v14 = vld [vmem:[%s940_s0 + $0x218] sm:$0xff]  ;;  %v554_v48 = vld [vmem:[%s940_s0 + $0x268] sm:$0xff] }
  0x20   :  { %v543_v15 = vld [vmem:[%s941_s2 + $0x16] ss:$0 sm:$0xff]  ;;  %v341_v17 = vmul.f32 %v539_v5, %v537_v4  ;;  %v342_v22 = vmul.f32 %v539_v5, %v538_v8  ;;  %v558_v58 = vld [vmem:[%s940_s0 + $0x280] sm:$0xff] }
  0x21   :  { %v238_v33 = vadd.f32 %v235_v10, %v223_v23  ;;  %v239_v34 = vadd.f32 %v236_v11, %v224_v24  ;;  %v240_v35 = vadd.f32 %v237_v16, %v225_v25  ;;  %v340_v16 = vmul.f32 %v539_v5, %v536_v3  ;;  %v544_v23 = vld [vmem:[%s940_s0 + $0x228] sm:$0xff]  ;;  %v545_v24 = vld [vmem:[%s940_s0 + $0x230] sm:$0xff]  ;;  %v560_v8 = vld [vmem:[%s942_s3] ss:$0 sm:$0xff] }
  0x22   :  { %v547_v25 = vld [vmem:[%s941_s2 + $0x17] ss:$0 sm:$0xff]  ;;  %v356_v27 = vmul.f32 %v543_v15, %v541_v14  ;;  %v357_v32 = vmul.f32 %v543_v15, %v542_v18 }
  0x23   :  { %v253_v43 = vadd.f32 %v250_v20, %v238_v33  ;;  %v254_v44 = vadd.f32 %v251_v21, %v239_v34  ;;  %v255_v45 = vadd.f32 %v252_v26, %v240_v35  ;;  %v355_v26 = vmul.f32 %v543_v15, %v540_v13  ;;  %v548_v33 = vld [vmem:[%s940_s0 + $0x240] sm:$0xff]  ;;  %v549_v34 = vld [vmem:[%s940_s0 + $0x248] sm:$0xff]  ;;  %v551_v35 = vld [vmem:[%s941_s2 + $0x18] ss:$0 sm:$0xff] }
  0x24   :  { %v371_v37 = vmul.f32 %v547_v25, %v545_v24  ;;  %v550_v38 = vld [vmem:[%s940_s0 + $0x250] sm:$0xff]  ;;  %v372_v42 = vmul.f32 %v547_v25, %v546_v28  ;;  %v386_v47 = vmul.f32 %v551_v35, %v549_v34 }
  0x25   :  { %v268_v53 = vadd.f32 %v265_v30, %v253_v43  ;;  %v269_v54 = vadd.f32 %v266_v31, %v254_v44  ;;  %v270_v55 = vadd.f32 %v267_v36, %v255_v45  ;;  %v370_v36 = vmul.f32 %v547_v25, %v544_v23  ;;  %v552_v43 = vld [vmem:[%s940_s0 + $0x258] sm:$0xff]  ;;  %v553_v44 = vld [vmem:[%s940_s0 + $0x260] sm:$0xff]  ;;  %v443_v18 = vld [vmem:[%s944_s1 + $0x10] sm:$0xff] }
  0x26   :  { %v555_v45 = vld [vmem:[%s941_s2 + $0x19] ss:$0 sm:$0xff]  ;;  %v387_v52 = vmul.f32 %v551_v35, %v550_v38 }
  0x27   :  { %v283_v63 = vadd.f32 %v280_v40, %v268_v53  ;;  %v284_v0 = vadd.f32 %v281_v41, %v269_v54  ;;  %v285_v1 = vadd.f32 %v282_v46, %v270_v55  ;;  %v385_v46 = vmul.f32 %v551_v35, %v548_v33  ;;  %v556_v53 = vld [vmem:[%s940_s0 + $0x270] sm:$0xff]  ;;  %v557_v54 = vld [vmem:[%s940_s0 + $0x278] sm:$0xff] }
  0x28   :  { %v559_v55 = vld [vmem:[%s941_s2 + $0x1a] ss:$0 sm:$0xff]  ;;  %v401_v57 = vmul.f32 %v555_v45, %v553_v44  ;;  %v402_v62 = vmul.f32 %v555_v45, %v554_v48 }
  0x29   :  { %v298_v9 = vadd.f32 %v295_v50, %v283_v63  ;;  %v299_v10 = vadd.f32 %v296_v51, %v284_v0  ;;  %v300_v11 = vadd.f32 %v297_v56, %v285_v1  ;;  %v400_v56 = vmul.f32 %v555_v45, %v552_v43 }
  0x2a   :  { %v415_v63 = vmul.f32 %v559_v55, %v556_v53  ;;  %v416_v0 = vmul.f32 %v559_v55, %v557_v54  ;;  %v417_v4 = vmul.f32 %v559_v55, %v558_v58 }
  0x2b   :  { %v313_v19 = vadd.f32 %v310_v60, %v298_v9  ;;  %v314_v20 = vadd.f32 %v311_v61, %v299_v10  ;;  %v315_v21 = vadd.f32 %v312_v2, %v300_v11 }
  0x2d   :  { %v328_v29 = vadd.f32 %v325_v6, %v313_v19  ;;  %v329_v30 = vadd.f32 %v326_v7, %v314_v20  ;;  %v330_v31 = vadd.f32 %v327_v12, %v315_v21  ;;  %v561_v12 = vld [vmem:[%s943_s4] ss:$0 sm:$0xff] }
  0x2f   :  { %v343_v39 = vadd.f32 %v340_v16, %v328_v29  ;;  %v344_v40 = vadd.f32 %v341_v17, %v329_v30  ;;  %v345_v41 = vadd.f32 %v342_v22, %v330_v31  ;;  %v441_v16 = vld [vmem:[%s944_s1] sm:$0xff]  ;;  %v442_v17 = vld [vmem:[%s944_s1 + $0x8] sm:$0xff] }
  0x31   :  { %v358_v49 = vadd.f32 %v355_v26, %v343_v39  ;;  %v359_v50 = vadd.f32 %v356_v27, %v344_v40  ;;  %v360_v51 = vadd.f32 %v357_v32, %v345_v41 }
  0x33   :  { %v373_v59 = vadd.f32 %v370_v36, %v358_v49  ;;  %v374_v60 = vadd.f32 %v371_v37, %v359_v50  ;;  %v375_v61 = vadd.f32 %v372_v42, %v360_v51 }
  0x35   :  { %v388_v1 = vadd.f32 %v385_v46, %v373_v59  ;;  %v389_v2 = vadd.f32 %v386_v47, %v374_v60  ;;  %v390_v3 = vadd.f32 %v387_v52, %v375_v61 }
  0x37   :  { %v403_v5 = vadd.f32 %v400_v56, %v388_v1  ;;  %v404_v6 = vadd.f32 %v401_v57, %v389_v2  ;;  %v405_v7 = vadd.f32 %v402_v62, %v390_v3 }
  0x39   :  { %v418_v9 = vadd.f32 %v415_v63, %v403_v5  ;;  %v419_v10 = vadd.f32 %v416_v0, %v404_v6  ;;  %v420_v11 = vadd.f32 %v417_v4, %v405_v7 }
  0x3b   :  { %v428_v13 = vmul.f32 %v560_v8, %v418_v9  ;;  %v429_v14 = vmul.f32 %v560_v8, %v419_v10  ;;  %v430_v15 = vmul.f32 %v560_v8, %v420_v11 }
  0x3d   :  { %v438_v19 = vadd.f32 %v561_v12, %v428_v13  ;;  %v439_v20 = vadd.f32 %v561_v12, %v429_v14  ;;  %v440_v21 = vadd.f32 %v561_v12, %v430_v15 }
  0x3f   :  { %v444_v22 = vadd.f32 %v441_v16, %v438_v19  ;;  %v445_v23 = vadd.f32 %v442_v17, %v439_v20  ;;  %v446_v24 = vadd.f32 %v443_v18, %v440_v21 }
  0x41   :  { %448 = vst.msk [vmem:[%s945_s5] sm:$0xff] %vm447_vm0, %v444_v22  ;;  %449 = vst.msk [vmem:[%s945_s5 + $0x8] sm:$0xff] %vm447_vm0, %v445_v23 }
  0x42   :  { %450 = vst.msk [vmem:[%s945_s5 + $0x10] sm:$0xff] %vm447_vm0, %v446_v24 }

// kernel: octformer_stage_forward.11
= control target key start
LH: loop header
LB: loop body
LE: loop exit
PB: predicated region body
PF: predicated region fallthrough
CT: control target
= control target key end

     0   :  { %vm25_vm0 = vcmask 130048   ;;  %vm173_vm1 = vcmask 392192   ;;  %s282_s0 = inlined_call_operand.vmem [shape: f32[32,16], index: 0, kind: input, shape index: {}]   ;;  %s283_s3 = inlined_call_operand.vmem [shape: bf16[16,48], index: 3, kind: input, shape index: {}]   ;;  %s284_s1 = inlined_call_operand.vmem [shape: f32[1,16], index: 1, kind: input, shape index: {}]   ;;  %s285_s2 = inlined_call_operand.vmem [shape: f32[1,16], index: 2, kind: input, shape index: {}]   ;;  %s286_s4 = inlined_call_operand.vmem [shape: f32[1,48], index: 4, kind: input, shape index: {}]   ;;  %s287_s5 = inlined_call_operand.vmem [shape: f32[32,48], index: 5, kind: output, shape index: {}]  }
   0x1   :  { %v21_v0 = vld [vmem:[%s282_s0] sm:$0xff]  ;;  %v23_v1 = vld [vmem:[%s282_s0 + $0x10] sm:$0xff]  ;;  %v22_v2 = vld [vmem:[%s282_s0 + $0x8] sm:$0xff] }
   0x2   :  { %v26_v3 = vsel %vm25_vm0, %v21_v0, 0.0  ;;  %v32_v4 = vsel %vm25_vm0, %v23_v1, 0.0  ;;  %v24_v5 = vld [vmem:[%s282_s0 + $0x18] sm:$0xff]  ;;  %v29_v6 = vsel %vm25_vm0, %v22_v2, 0.0  ;;  %v197_v28 = vld [vmem:[%s283_s3] sm:$0xff]  }
   0x3   :  { %27 = vadd.xlane.f32.xlu0 %v26_v3  ;;  %33 = vadd.xlane.f32.xlu1 %v32_v4  ;;  %v35_v7 = vsel %vm25_vm0, %v24_v5, 0.0  ;;  %v182_v43 = vld [vmem:[%s284_s1] ss:$0 sm:$0xff] }
   0x4   :  { %191 = vmatprep.subr.bf16.mxu0 %v197_v28  ;;  %v183_v49 = vld [vmem:[%s285_s2] ss:$0 sm:$0xff] }
   0x5   :  { %192 = vmatpush3.bf16.msra.mxu0 %v197_v28  ;;  %v184_v61 = vld [vmem:[%s286_s4] ss:$0 sm:$0xff] }
   0x7   :  { %30 = vadd.xlane.f32.xlu0 %v29_v6  ;;  %36 = vadd.xlane.f32.xlu1 %v35_v7 }
  0x90   :  { %v28_v8 = vpop.xlane.xlu0 %27  ;;  %v34_v9 = vpop.xlane.xlu1 %33 }
  0x91   :  { %v39_v10 = vmul.f32 0.0625, %v28_v8  ;;  %v41_v11 = vmul.f32 0.0625, %v34_v9 }
  0x93   :  { %v43_v12 = vsub.f32 %v21_v0, %v39_v10  ;;  %v45_v13 = vsub.f32 %v23_v1, %v41_v11 }
  0x94   :  { %v31_v14 = vpop.xlane.xlu0 %30  ;;  %v37_v15 = vpop.xlane.xlu1 %36 }
  0x95   :  { %v40_v16 = vmul.f32 0.0625, %v31_v14  ;;  %v42_v17 = vmul.f32 0.0625, %v37_v15  ;;  %v47_v18 = vmul.f32 %v43_v12, %v43_v12  ;;  %v49_v19 = vmul.f32 %v45_v13, %v45_v13 }
  0x97   :  { %v44_v20 = vsub.f32 %v22_v2, %v40_v16  ;;  %v46_v21 = vsub.f32 %v24_v5, %v42_v17  ;;  %v51_v22 = vsel %vm25_vm0, %v47_v18, 0.0  ;;  %v57_v23 = vsel %vm25_vm0, %v49_v19, 0.0 }
  0x98   :  { %52 = vadd.xlane.f32.xlu0 %v51_v22 }
  0x99   :  { %v48_v24 = vmul.f32 %v44_v20, %v44_v20  ;;  %v50_v25 = vmul.f32 %v46_v21, %v46_v21 }
  0x9b   :  { %v54_v26 = vsel %vm25_vm0, %v48_v24, 0.0  ;;  %v60_v27 = vsel %vm25_vm0, %v50_v25, 0.0 }
  0x9c   :  { %58 = vadd.xlane.f32.xlu0 %v57_v23  ;;  %55 = vadd.xlane.f32.xlu1 %v54_v26 }
  0xa0   :  { %61 = vadd.xlane.f32.xlu1 %v60_v27 }
 0x125   :  { %v53_v29 = vpop.xlane.xlu0 %52 }
 0x126   :  { %v63_v30 = vmul.f32 0.0625, %v53_v29 }
 0x128   :  { %v67_v31 = vadd.f32 1e-05, %v63_v30 }
 0x129   :  { %v56_v32 = vpop.xlane.xlu1 %55  ;;  %v59_v33 = vpop.xlane.xlu0 %58 }
 0x12a   :  { %198 = vrsqrt.f32 %v67_v31  ;;  %v64_v34 = vmul.f32 0.0625, %v56_v32  ;;  %v65_v35 = vmul.f32 0.0625, %v59_v33 }
 0x12c   :  { %v68_v36 = vadd.f32 1e-05, %v64_v34  ;;  %v69_v37 = vadd.f32 1e-05, %v65_v35 }
 0x12d   :  { %v62_v38 = vpop.xlane.xlu1 %61 }
 0x12e   :  { %200 = vrsqrt.f32 %v68_v36  ;;  %v66_v39 = vmul.f32 0.0625, %v62_v38 }
 0x12f   :  { %202 = vrsqrt.f32 %v69_v37 }
 0x130   :  { %v70_v40 = vadd.f32 1e-05, %v66_v39 }
 0x132   :  { %204 = vrsqrt.f32 %v70_v40 }
 0x134   :  { %v199_v41 = vpop.eup %198 }
 0x135   :  { %v75_v42 = vmul.f32 %v199_v41, %v43_v12 }
 0x137   :  { %v86_v47 = vmul.f32 %v182_v43, %v75_v42 }
 0x138   :  { %v201_v44 = vpop.eup %200 }
 0x139   :  { %v203_v45 = vpop.eup %202  ;;  %v76_v46 = vmul.f32 %v201_v44, %v44_v20  ;;  %v97_v53 = vadd.f32 %v183_v49, %v86_v47 }
 0x13a   :  { %v77_v48 = vmul.f32 %v203_v45, %v45_v13 }
 0x13b   :  { %v87_v50 = vmul.f32 %v182_v43, %v76_v46 }
 0x13c   :  { %v205_v51 = vpop.eup %204  ;;  %v88_v55 = vmul.f32 %v182_v43, %v77_v48 }
 0x13d   :  { %v78_v52 = vmul.f32 %v205_v51, %v46_v21  ;;  %v98_v54 = vadd.f32 %v183_v49, %v87_v50 }
 0x13e   :  { %v99_v58 = vadd.f32 %v183_v49, %v88_v55 }
 0x13f   :  { %v101_v56 = vpack.c.bf16 %v98_v54, %v97_v53  ;;  %v89_v57 = vmul.f32 %v182_v43, %v78_v52 }
 0x141   :  { %193 = vmatprep.mubr.msk.bf16.mxu0 %vm25_vm0, %v101_v56  ;;  %v100_v59 = vadd.f32 %v183_v49, %v89_v57 }
 0x143   :  { %v102_v60 = vpack.c.bf16 %v100_v59, %v99_v58 }
 0x145   :  { %194 = vmatmul.mubr.msk.bf16.vlgmr.msra.gmra.mrb[0].mxu0 %vm25_vm0, %v102_v60 }
 0x218   :  { %v195_v62 = vpop.f32.mrb[0].mxu0 }
 0x219   :  { %v167_v63 = vadd.f32 %v195_v62, %v184_v61  ;;  %v158_v0 = vpop.f32.mrb[1].mxu0 }
 0x21a   :  { %v159_v1 = vadd.f32 %v184_v61, %v158_v0  ;;  %v196_v2 = vpop.f32.mrb[2].mxu0 }
 0x21b   :  { %176 = vst.msk [vmem:[%s287_s5 + $0x10] sm:$0xff] %vm173_vm1, %v167_v63  ;;  %v170_v3 = vadd.f32 %v196_v2, %v184_v61  ;;  %v161_v4 = vpop.f32.mrb[3].mxu0 }
 0x21c   :  { %174 = vst.msk [vmem:[%s287_s5] sm:$0xff] %vm173_vm1, %v159_v1  ;;  %v162_v5 = vadd.f32 %v184_v61, %v161_v4 }
 0x21d   :  { %177 = vst.msk [vmem:[%s287_s5 + $0x18] sm:$0xff] %vm173_vm1, %v170_v3 }
 0x21e   :  { %175 = vst.msk [vmem:[%s287_s5 + $0x8] sm:$0xff] %vm173_vm1, %v162_v5 }

// kernel: octformer_stage_forward.13
= control target key start
LH: loop header
LB: loop body
LE: loop exit
PB: predicated region body
PF: predicated region fallthrough
CT: control target
= control target key end

     0   :  { %vm38_vm0 = vcmask 130048   ;;  %s183_s2 = inlined_call_operand.vmem [shape: bf16[16,16], index: 2, kind: input, shape index: {}]   ;;  %s184_s0 = inlined_call_operand.vmem [shape: f32[23,16], index: 0, kind: input, shape index: {}]   ;;  %s185_s3 = inlined_call_operand.vmem [shape: f32[1,16], index: 3, kind: input, shape index: {}]   ;;  %s186_s1 = inlined_call_operand.vmem [shape: f32[23,16], index: 1, kind: input, shape index: {}]   ;;  %s187_s4 = inlined_call_operand.vmem [shape: f32[23,16], index: 4, kind: output, shape index: {}]  }
   0x1   :  { %v119_v0 = vld [vmem:[%s183_s2] sm:$0xff]   ;;  %v19_v2 = vld [vmem:[%s184_s0 + $0x8] sm:$0xff]  ;;  %v20_v3 = vld [vmem:[%s184_s0 + $0x10] sm:$0xff] }
   0x2   :  { %v18_v1 = vld [vmem:[%s184_s0] sm:$0xff]  ;;  %113 = vmatprep.subr.bf16.mxu0 %v119_v0  ;;  %v22_v5 = vpack.c.bf16 %v20_v3, %v20_v3  ;;  %v95_v8 = vld [vmem:[%s186_s1 + $0x10] sm:$0xff]  ;;  %v94_v16 = vld [vmem:[%s186_s1 + $0x8] sm:$0xff] }
   0x3   :  { %v21_v4 = vpack.c.bf16 %v19_v2, %v18_v1  ;;  %114 = vmatpush3.bf16.msra.mxu0 %v119_v0  ;;  %v106_v6 = vld [vmem:[%s185_s3] ss:$0 sm:$0xff] }
   0x4   :  { %v93_v11 = vld [vmem:[%s186_s1] sm:$0xff] }
   0x5   :  { %115 = vmatprep.mubr.msk.bf16.mxu0 %vm38_vm0, %v21_v4 }
   0x6   :  { %116 = vmatmul.mubr.msk.bf16.vlgmr.msra.gmra.mrb[0].mxu0 %vm38_vm0, %v22_v5 }
  0xd9   :  { %v117_v7 = vpop.f32.mrb[0].mxu0 }
  0xda   :  { %v88_v9 = vadd.f32 %v117_v7, %v106_v6  ;;  %v79_v10 = vpop.f32.mrb[1].mxu0 }
  0xdb   :  { %v80_v12 = vadd.f32 %v106_v6, %v79_v10  ;;  %v118_v13 = vpop.f32.mrb[2].mxu0 }
  0xdc   :  { %v98_v14 = vadd.f32 %v95_v8, %v88_v9  ;;  %v82_v15 = vpop.f32.mrb[3].mxu0 }
  0xdd   :  { %v96_v17 = vadd.f32 %v93_v11, %v80_v12  ;;  %v83_v18 = vadd.f32 %v106_v6, %v82_v15 }
  0xde   :  { %101 = vst.msk [vmem:[%s187_s4 + $0x10] sm:$0xff] %vm38_vm0, %v98_v14 }
  0xdf   :  { %99 = vst.msk [vmem:[%s187_s4] sm:$0xff] %vm38_vm0, %v96_v17  ;;  %v97_v19 = vadd.f32 %v94_v16, %v83_v18 }
  0xe1   :  { %100 = vst.msk [vmem:[%s187_s4 + $0x8] sm:$0xff] %vm38_vm0, %v97_v19 }

// kernel: octformer_stage_forward.14
= control target key start
LH: loop header
LB: loop body
LE: loop exit
PB: predicated region body
PF: predicated region fallthrough
CT: control target
= control target key end

     0   :  { %vm30_vm0 = vcmask 130048   ;;  %vm230_vm1 = vcmask 523264   ;;  %s463_s0 = inlined_call_operand.vmem [shape: f32[23,16], index: 0, kind: input, shape index: {}]   ;;  %s464_s3 = inlined_call_operand.vmem [shape: bf16[16,64], index: 3, kind: input, shape index: {}]   ;;  %s465_s1 = inlined_call_operand.vmem [shape: f32[1,16], index: 1, kind: input, shape index: {}]   ;;  %s466_s2 = inlined_call_operand.vmem [shape: f32[1,16], index: 2, kind: input, shape index: {}]   ;;  %s467_s5 = inlined_call_operand.vmem [shape: bf16[64,16], index: 5, kind: input, shape index: {}]   ;;  %s468_s4 = inlined_call_operand.vmem [shape: f32[1,64], index: 4, kind: input, shape index: {}]   ;;  %s469_s6 = inlined_call_operand.vmem [shape: f32[1,16], index: 6, kind: input, shape index: {}]   ;;  %s470_s7 = inlined_call_operand.vmem [shape: f32[23,16], index: 7, kind: output, shape index: {}]  }
   0x1   :  { %v395_v0 = vld [vmem:[%s463_s0] sm:$0xff]  ;;  %v400_v1 = vld [vmem:[%s463_s0 + $0x10] sm:$0xff]  ;;  %v405_v2 = vld [vmem:[%s463_s0 + $0x8] sm:$0xff] }
   0x2   :  { %v31_v3 = vsel %vm30_vm0, %v395_v0, 0.0  ;;  %v37_v4 = vsel %vm30_vm0, %v400_v1, 0.0  ;;  %v34_v5 = vsel %vm30_vm0, %v405_v2, 0.0  ;;  %v335_v21 = vld [vmem:[%s464_s3] sm:$0xff]   ;;  %v337_v48 = vld [vmem:[%s467_s5 + $0x8] sm:$0xff]   ;;  %v338_v49 = vld [vmem:[%s467_s5 + $0x10] sm:$0xff]  }
   0x3   :  { %32 = vadd.xlane.f32.xlu0 %v31_v3  ;;  %38 = vadd.xlane.f32.xlu1 %v37_v4  ;;  %v295_v33 = vld [vmem:[%s465_s1] ss:$0 sm:$0xff]  ;;  %v339_v50 = vld [vmem:[%s467_s5 + $0x18] sm:$0xff]  }
   0x4   :  { %317 = vmatprep.subr.bf16.mxu0 %v335_v21  ;;  %v296_v39 = vld [vmem:[%s466_s2] ss:$0 sm:$0xff] }
   0x5   :  { %318 = vmatpush3.bf16.msra.mxu0 %v335_v21  ;;  %v336_v47 = vld [vmem:[%s467_s5] sm:$0xff]  }
   0x6   :  { %323 = vmatprep.subr.bf16.mxu1 %v336_v47  ;;  %v297_v51 = vld [vmem:[%s468_s4] ss:$0 sm:$0xff] }
   0x7   :  { %35 = vadd.xlane.f32.xlu0 %v34_v5  ;;  %324 = vmatpush3.bf16.msra.mxu1 %v336_v47 }
   0x8   :  { %325 = vmatprep.subr.bf16.mxu1 %v337_v48 }
   0xb   :  { %326 = vmatpush3.bf16.msra.mxu1 %v337_v48 }
   0xc   :  { %327 = vmatprep.subr.bf16.mxu1 %v338_v49 }
   0xf   :  { %328 = vmatpush3.bf16.msra.mxu1 %v338_v49 }
  0x10   :  { %329 = vmatprep.subr.bf16.mxu1 %v339_v50 }
  0x13   :  { %330 = vmatpush3.bf16.msra.mxu1 %v339_v50 }
  0x90   :  { %v33_v6 = vpop.xlane.xlu0 %32  ;;  %v39_v7 = vpop.xlane.xlu1 %38 }
  0x91   :  { %v41_v8 = vmul.f32 0.0625, %v33_v6  ;;  %v43_v9 = vmul.f32 0.0625, %v39_v7 }
  0x93   :  { %v44_v10 = vsub.f32 %v395_v0, %v41_v8  ;;  %v46_v11 = vsub.f32 %v400_v1, %v43_v9 }
  0x94   :  { %v36_v12 = vpop.xlane.xlu0 %35 }
  0x95   :  { %v42_v13 = vmul.f32 0.0625, %v36_v12  ;;  %v47_v14 = vmul.f32 %v44_v10, %v44_v10  ;;  %v49_v15 = vmul.f32 %v46_v11, %v46_v11 }
  0x97   :  { %v45_v16 = vsub.f32 %v405_v2, %v42_v13  ;;  %v50_v17 = vsel %vm30_vm0, %v47_v14, 0.0  ;;  %v56_v18 = vsel %vm30_vm0, %v49_v15, 0.0 }
  0x98   :  { %51 = vadd.xlane.f32.xlu1 %v50_v17 }
  0x99   :  { %v48_v19 = vmul.f32 %v45_v16, %v45_v16 }
  0x9b   :  { %v53_v20 = vsel %vm30_vm0, %v48_v19, 0.0 }
  0x9c   :  { %57 = vadd.xlane.f32.xlu1 %v56_v18  ;;  %54 = vadd.xlane.f32.xlu0 %v53_v20 }
 0x125   :  { %v52_v22 = vpop.xlane.xlu1 %51 }
 0x126   :  { %v59_v23 = vmul.f32 0.0625, %v52_v22 }
 0x128   :  { %v62_v24 = vadd.f32 1e-05, %v59_v23 }
 0x129   :  { %v58_v25 = vpop.xlane.xlu1 %57  ;;  %v55_v26 = vpop.xlane.xlu0 %54 }
 0x12a   :  { %340 = vrsqrt.f32 %v62_v24  ;;  %v61_v27 = vmul.f32 0.0625, %v58_v25  ;;  %v60_v28 = vmul.f32 0.0625, %v55_v26 }
 0x12c   :  { %v64_v29 = vadd.f32 1e-05, %v61_v27  ;;  %v63_v30 = vadd.f32 1e-05, %v60_v28  ;;  %v301_v27 = vld [vmem:[%s469_s6] ss:$0 sm:$0xff] }
 0x12e   :  { %342 = vrsqrt.f32 %v64_v29 }
 0x12f   :  { %344 = vrsqrt.f32 %v63_v30 }
 0x134   :  { %v341_v31 = vpop.eup %340 }
 0x135   :  { %v68_v32 = vmul.f32 %v341_v31, %v44_v10 }
 0x137   :  { %v78_v38 = vmul.f32 %v295_v33, %v68_v32 }
 0x138   :  { %v343_v34 = vpop.eup %342 }
 0x139   :  { %v345_v35 = vpop.eup %344  ;;  %v70_v36 = vmul.f32 %v343_v34, %v46_v11  ;;  %v88_v43 = vadd.f32 %v296_v39, %v78_v38 }
 0x13a   :  { %v69_v37 = vmul.f32 %v345_v35, %v45_v16 }
 0x13b   :  { %v80_v40 = vmul.f32 %v295_v33, %v70_v36 }
 0x13c   :  { %v79_v41 = vmul.f32 %v295_v33, %v69_v37 }
 0x13d   :  { %v90_v42 = vadd.f32 %v296_v39, %v80_v40 }
 0x13e   :  { %v89_v44 = vadd.f32 %v296_v39, %v79_v41 }
 0x13f   :  { %v92_v45 = vpack.c.bf16 %v90_v42, %v90_v42 }
 0x140   :  { %v91_v46 = vpack.c.bf16 %v89_v44, %v88_v43 }
 0x142   :  { %319 = vmatprep.mubr.msk.bf16.mxu0 %vm30_vm0, %v91_v46 }
 0x143   :  { %320 = vmatmul.mubr.msk.bf16.vlgmr.msra.gmra.mrb[0].mxu0 %vm30_vm0, %v92_v45 }
 0x216   :  { %v321_v52 = vpop.f32.mrb[0].mxu0 }
 0x217   :  { %v157_v53 = vadd.f32 %v321_v52, %v297_v51  ;;  %v148_v54 = vpop.f32.mrb[1].mxu0 }
 0x218   :  { %v149_v55 = vadd.f32 %v297_v51, %v148_v54  ;;  %v322_v56 = vpop.f32.mrb[2].mxu0 }
 0x219   :  { %v164_v57 = vmul.f32 %v157_v53, %v157_v53  ;;  %v151_v58 = vpop.f32.mrb[3].mxu0 }
 0x21a   :  { %v162_v59 = vmul.f32 %v149_v55, %v149_v55  ;;  %v152_v60 = vadd.f32 %v297_v51, %v151_v58 }
 0x21b   :  { %v167_v61 = vmul.f32 %v164_v57, %v157_v53 }
 0x21c   :  { %v165_v62 = vmul.f32 %v162_v59, %v149_v55  ;;  %v163_v63 = vmul.f32 %v152_v60, %v152_v60 }
 0x21d   :  { %v170_v3 = vmul.f32 0.044715, %v167_v61 }
 0x21e   :  { %v168_v4 = vmul.f32 0.044715, %v165_v62  ;;  %v166_v5 = vmul.f32 %v163_v63, %v152_v60 }
 0x21f   :  { %v173_v6 = vadd.f32 %v170_v3, %v157_v53 }
 0x220   :  { %v171_v7 = vadd.f32 %v168_v4, %v149_v55  ;;  %v169_v8 = vmul.f32 0.044715, %v166_v5 }
 0x221   :  { %v176_v9 = vmul.f32 0.7978846, %v173_v6 }
 0x222   :  { %v174_v10 = vmul.f32 0.7978846, %v171_v7  ;;  %v172_v11 = vadd.f32 %v169_v8, %v152_v60 }
 0x223   :  { %346 = vtanh.f32 %v176_v9 }
 0x224   :  { %v175_v12 = vmul.f32 0.7978846, %v172_v11  ;;  %348 = vtanh.f32 %v174_v10 }
 0x226   :  { %350 = vtanh.f32 %v175_v12 }
 0x22d   :  { %v347_v13 = vpop.eup %346 }
 0x22e   :  { %v349_v14 = vpop.eup %348  ;;  %v182_v15 = vadd.f32 1.0, %v347_v13 }
 0x22f   :  { %v180_v16 = vadd.f32 1.0, %v349_v14 }
 0x230   :  { %v351_v17 = vpop.eup %350  ;;  %v185_v18 = vmul.f32 0.5, %v182_v15 }
 0x231   :  { %v181_v19 = vadd.f32 1.0, %v351_v17  ;;  %v183_v20 = vmul.f32 0.5, %v180_v16 }
 0x232   :  { %v188_v22 = vmul.f32 %v185_v18, %v157_v53 }
 0x233   :  { %v184_v21 = vmul.f32 0.5, %v181_v19  ;;  %v186_v23 = vmul.f32 %v183_v20, %v149_v55 }
 0x234   :  { %v190_v26 = vpack.c.bf16 %v188_v22, %v188_v22 }
 0x235   :  { %v187_v24 = vmul.f32 %v184_v21, %v152_v60 }
 0x237   :  { %v189_v25 = vpack.c.bf16 %v187_v24, %v186_v23 }
 0x239   :  { %331 = vmatprep.mubr.msk.bf16.mxu1 %vm230_vm1, %v189_v25 }
 0x23a   :  { %332 = vmatmul.mubr.msk.bf16.vlgmr.msra.gmra.mrb[0].mxu1 %vm230_vm1, %v190_v26 }
 0x30d   :  { %v333_v28 = vpop.f32.mrb[0].mxu1 }
 0x30e   :  { %v280_v29 = vadd.f32 %v333_v28, %v301_v27  ;;  %v271_v30 = vpop.f32.mrb[1].mxu1 }
 0x30f   :  { %v272_v31 = vadd.f32 %v301_v27, %v271_v30  ;;  %v334_v32 = vpop.f32.mrb[2].mxu1 }
 0x310   :  { %v287_v33 = vadd.f32 %v280_v29, %v400_v1  ;;  %v274_v34 = vpop.f32.mrb[3].mxu1 }
 0x311   :  { %v285_v35 = vadd.f32 %v272_v31, %v395_v0  ;;  %v275_v36 = vadd.f32 %v301_v27, %v274_v34 }
 0x312   :  { %290 = vst.msk [vmem:[%s470_s7 + $0x10] sm:$0xff] %vm30_vm0, %v287_v33 }
 0x313   :  { %288 = vst.msk [vmem:[%s470_s7] sm:$0xff] %vm30_vm0, %v285_v35  ;;  %v286_v37 = vadd.f32 %v275_v36, %v405_v2 }
 0x315   :  { %289 = vst.msk [vmem:[%s470_s7 + $0x8] sm:$0xff] %vm30_vm0, %v286_v37 }

// kernel: octformer_stage_forward.12
= control target key start
LH: loop header
LB: loop body
LE: loop exit
PB: predicated region body
PF: predicated region fallthrough
CT: control target
= control target key end

     0   :  { %v1119_v3 = vmov 0.0   ;;  %vm1120_vm0 = vmmov 0   ;;  %s1121_s17 = smov 112   ;;  %vm31_vm1 = vcmask 64512   ;;  %s1122_s25 = smov 96   ;;  %vm278_vm2 = vcmask 1043456   ;;  %s1338_s0 = inlined_call_operand.vmem [shape: f32[4,8,48], index: 0, kind: input, shape index: {}]   ;;  %s1339_s1 = inlined_call_operand.vmem [shape: f32[4,2,8,8], index: 1, kind: input, shape index: {}]   ;;  %s1340_s2 = inlined_call_operand.vmem [shape: f32[4,8,16], index: 2, kind: output, shape index: {}]  }
   0x1   :  { %v12_v0 = vld [vmem:[%s1338_s0] sm:$0xff]  ;;  %v13_v1 = vld [vmem:[%s1338_s0 + $0x8] sm:$0xff]  ;;  %v14_v2 = vld [vmem:[%s1338_s0 + $0x10] sm:$0xff]  ;;  %983 = vmatprep.subr.bf16.mxu0 %v1119_v3  ;;  %989 = vmatprep.subr.bf16.mxu1 %v1119_v3  ;;  %s1123_s26 = smov 104   ;;  %s1124_s27 = smov 120   ;;  %vm926_vm3 = vcmask 130048  }
   0x2   :  { %v1153_v4 = vpack.c.bf16 %v12_v0, %v12_v0  ;;  %v1155_v5 = vpack.c.bf16 %v14_v2, %v14_v2  ;;  %v15_v6 = vld [vmem:[%s1338_s0 + $0x18] sm:$0xff]  ;;  %985 = vmatprep.mubr.msk.bf16.mxu0 %vm1120_vm0, %v1119_v3  ;;  %991 = vmatprep.mubr.msk.bf16.mxu1 %vm1120_vm0, %v1119_v3  ;;  %v1165_v7 = vpack.c.bf16 %v13_v1, %v13_v1  ;;  %v16_v17 = vld [vmem:[%s1339_s1] sm:$0xff]  ;;  %v18_v22 = vld [vmem:[%s1339_s1 + $0x10] sm:$0xff]  ;;  %s1125_s8 = smov 88  }
   0x3   :  { %v1168_v8 = vpack.c.bf16 %v15_v6, %v15_v6  ;;  %v20_v29 = vld [vmem:[%s1339_s1 + $0x20] sm:$0xff]  ;;  %v22_v35 = vld [vmem:[%s1339_s1 + $0x30] sm:$0xff] }
   0x4   :  { %29 = vrot.lane.b32.xlu0 %v1153_v4, %s1121_s17  ;;  %128 = vrot.lane.b32.xlu1 %v1155_v5, %s1121_s17 }
   0x8   :  { %79 = vrot.lane.b32.xlu0 %v1165_v7, %s1121_s17  ;;  %177 = vrot.lane.b32.xlu1 %v1168_v8, %s1121_s17 }
  0x76   :  { %v30_v9 = vpop.permute.xlu0 %29  ;;  %v129_v11 = vpop.permute.xlu1 %128 }
  0x77   :  { %v36_v10 = vsel %vm31_vm1, %v30_v9, 0  ;;  %v134_v14 = vsel %vm31_vm1, %v129_v11, 0 }
  0x78   :  { %984 = vmatpush3.bf16.xpose.msra.mxu0 %v36_v10 }
  0x79   :  { %995 = vmatprep.subr.bf16.mxu0 %v1119_v3 }
  0x7a   :  { %v80_v12 = vpop.permute.xlu0 %79  ;;  %v178_v15 = vpop.permute.xlu1 %177 }
  0x7b   :  { %v85_v13 = vsel %vm31_vm1, %v80_v12, 0  ;;  %v183_v16 = vsel %vm31_vm1, %v178_v15, 0 }
  0x7c   :  { %990 = vmatpush3.bf16.xpose.msra.mxu1 %v85_v13 }
  0x7d   :  { %1001 = vmatprep.subr.bf16.mxu1 %v1119_v3 }
  0x7f   :  { %986 = vmatmul.mubr.msk.bf16.vlgmr.msra.gmra.mrb[0].mxu0 %vm31_vm1, %v1153_v4 }
  0x80   :  { %996 = vmatpush3.bf16.xpose.msra.mxu0 %v134_v14  ;;  %997 = vmatprep.mubr.msk.bf16.mxu0 %vm1120_vm0, %v1119_v3 }
  0x81   :  { %1007 = vmatprep.subr.bf16.mxu0 %v1119_v3 }
  0x83   :  { %992 = vmatmul.mubr.msk.bf16.vlgmr.msra.gmra.mrb[0].mxu1 %vm31_vm1, %v1165_v7 }
  0x84   :  { %1002 = vmatpush3.bf16.xpose.msra.mxu1 %v183_v16  ;;  %1003 = vmatprep.mubr.msk.bf16.mxu1 %vm1120_vm0, %v1119_v3 }
  0x85   :  { %1013 = vmatprep.subr.bf16.mxu1 %v1119_v3 }
  0x87   :  { %998 = vmatmul.mubr.msk.bf16.vlgmr.msra.gmra.mrb[4].mxu0 %vm31_vm1, %v1155_v5 }
  0x88   :  { %1009 = vmatprep.mubr.msk.bf16.mxu0 %vm1120_vm0, %v1119_v3 }
  0x8b   :  { %1004 = vmatmul.mubr.msk.bf16.vlgmr.msra.gmra.mrb[4].mxu1 %vm31_vm1, %v1168_v8 }
  0x8c   :  { %1015 = vmatprep.mubr.msk.bf16.mxu1 %vm1120_vm0, %v1119_v3 }
 0x152   :  { %v72_v18 = vpop.f32.mrb[0].mxu0 }
 0x153   :  { %v73_v19 = vadd.f32 %v72_v18, %v16_v17  ;;  %v987_v20 = vpop.f32.mrb[1].mxu0 }
 0x154   :  { %v75_v21 = vpop.f32.mrb[2].mxu0 }
 0x155   :  { %v988_v23 = vpop.f32.mrb[3].mxu0  ;;  %v225_v24 = vsel %vm31_vm1, %v73_v19, -inf }
 0x156   :  { %226 = vmax.xlane.f32.xlu0 %v225_v24  ;;  %v121_v25 = vpop.f32.mrb[0].mxu1 }
 0x157   :  { %v122_v26 = vadd.f32 %v121_v25, %v18_v22  ;;  %v993_v27 = vpop.f32.mrb[1].mxu1 }
 0x158   :  { %v124_v28 = vpop.f32.mrb[2].mxu1 }
 0x159   :  { %v228_v30 = vsel %vm31_vm1, %v122_v26, -inf  ;;  %v994_v31 = vpop.f32.mrb[3].mxu1 }
 0x15a   :  { %v170_v32 = vpop.f32.mrb[4].mxu0  ;;  %229 = vmax.xlane.f32.xlu1 %v228_v30 }
 0x15b   :  { %v171_v33 = vadd.f32 %v170_v32, %v20_v29  ;;  %v999_v34 = vpop.f32.mrb[5].mxu0 }
 0x15c   :  { %v173_v36 = vpop.f32.mrb[6].mxu0 }
 0x15d   :  { %v231_v37 = vsel %vm31_vm1, %v171_v33, -inf  ;;  %v1000_v38 = vpop.f32.mrb[7].mxu0 }
 0x15e   :  { %232 = vmax.xlane.f32.xlu0 %v231_v37  ;;  %v219_v39 = vpop.f32.mrb[4].mxu1 }
 0x15f   :  { %v220_v40 = vadd.f32 %v219_v39, %v22_v35  ;;  %v1005_v41 = vpop.f32.mrb[5].mxu1 }
 0x160   :  { %v222_v42 = vpop.f32.mrb[6].mxu1 }
 0x161   :  { %v234_v43 = vsel %vm31_vm1, %v220_v40, -inf  ;;  %v1006_v44 = vpop.f32.mrb[7].mxu1 }
 0x162   :  { %235 = vmax.xlane.f32.xlu0 %v234_v43 }
 0x16b   :  { %273 = vrot.lane.b32.xlu1 %v1153_v4, %s1122_s25 }
 0x1e3   :  { %v227_v45 = vpop.xlane.xlu0 %226 }
 0x1e4   :  { %v237_v46 = vsub.f32 %v73_v19, %v227_v45 }
 0x1e6   :  { %v241_v47 = vmul.f32 1.442695, %v237_v46 }
 0x1e7   :  { %v230_v48 = vpop.xlane.xlu1 %229 }
 0x1e8   :  { %1087 = vpow2.f32 %v241_v47  ;;  %v238_v49 = vsub.f32 %v122_v26, %v230_v48 }
 0x1ea   :  { %v243_v50 = vmul.f32 1.442695, %v238_v49 }
 0x1eb   :  { %v274_v51 = vpop.permute.xlu1 %273  ;;  %v233_v57 = vpop.xlane.xlu0 %232 }
 0x1ec   :  { %1089 = vpow2.f32 %v243_v50  ;;  %v280_v52 = vsel %vm278_vm2, %v274_v51, 0  ;;  %v239_v59 = vsub.f32 %v171_v33, %v233_v57 }
 0x1ed   :  { %1008 = vmatpush3.bf16.msra.mxu0 %v280_v52 }
 0x1ee   :  { %1019 = vmatprep.subr.bf16.mxu0 %v1119_v3  ;;  %v245_v61 = vmul.f32 1.442695, %v239_v59  ;;  %v19_v59 = vld [vmem:[%s1339_s1 + $0x18] sm:$0xff] }
 0x1ef   :  { %v236_v58 = vpop.xlane.xlu0 %235 }
 0x1f0   :  { %v240_v60 = vsub.f32 %v220_v40, %v236_v58  ;;  %1091 = vpow2.f32 %v245_v61  ;;  %v17_v58 = vld [vmem:[%s1339_s1 + $0x8] sm:$0xff] }
 0x1f2   :  { %v1088_v53 = vpop.eup %1087  ;;  %v247_v62 = vmul.f32 1.442695, %v240_v60 }
 0x1f3   :  { %v249_v54 = vsel %vm31_vm1, %v1088_v53, 0.0 }
 0x1f4   :  { %250 = vadd.xlane.f32.xlu1 %v249_v54  ;;  %1093 = vpow2.f32 %v247_v62 }
 0x1f6   :  { %v1090_v55 = vpop.eup %1089 }
 0x1f7   :  { %v252_v56 = vsel %vm31_vm1, %v1090_v55, 0.0 }
 0x1f8   :  { %253 = vadd.xlane.f32.xlu0 %v252_v56 }
 0x1fa   :  { %v1092_v63 = vpop.eup %1091 }
 0x1fb   :  { %v255_v1 = vsel %vm31_vm1, %v1092_v63, 0.0 }
 0x1fe   :  { %v1094_v0 = vpop.eup %1093 }
 0x1ff   :  { %v258_v2 = vsel %vm31_vm1, %v1094_v0, 0.0 }
 0x205   :  { %370 = vrot.lane.b32.xlu1 %v1155_v5, %s1122_s25 }
 0x209   :  { %418 = vrot.lane.b32.xlu1 %v1168_v8, %s1122_s25 }
 0x20e   :  { %322 = vrot.lane.b32.xlu0 %v1165_v7, %s1122_s25 }
 0x22d   :  { %256 = vadd.xlane.f32.xlu1 %v255_v1  ;;  %259 = vadd.xlane.f32.xlu0 %v258_v2 }
 0x23e   :  { %518 = vrot.lane.b32.xlu1 %v1165_v7, %s1123_s26 }
 0x242   :  { %516 = vrot.lane.b32.xlu1 %v1165_v7, %s1124_s27 }
 0x243   :  { %468 = vrot.lane.b32.xlu0 %v1153_v4, %s1123_s26 }
 0x246   :  { %618 = vrot.lane.b32.xlu1 %v1168_v8, %s1123_s26 }
 0x247   :  { %466 = vrot.lane.b32.xlu0 %v1153_v4, %s1124_s27 }
 0x24a   :  { %616 = vrot.lane.b32.xlu1 %v1168_v8, %s1124_s27 }
 0x24b   :  { %568 = vrot.lane.b32.xlu0 %v1155_v5, %s1123_s26 }
 0x24f   :  { %566 = vrot.lane.b32.xlu0 %v1155_v5, %s1124_s27 }
 0x281   :  { %v251_v6 = vpop.xlane.xlu1 %250 }
 0x282   :  { %1095 = vrcp.f32 %v251_v6 }
 0x285   :  { %v254_v9 = vpop.xlane.xlu0 %253  ;;  %v371_v13 = vpop.permute.xlu1 %370 }
 0x286   :  { %1097 = vrcp.f32 %v254_v9  ;;  %v376_v17 = vsel %vm278_vm2, %v371_v13, 0  ;;  %v21_v13 = vld [vmem:[%s1339_s1 + $0x28] sm:$0xff] }
 0x289   :  { %v323_v10 = vpop.permute.xlu0 %322  ;;  %v419_v19 = vpop.permute.xlu1 %418 }
 0x28a   :  { %v328_v11 = vsel %vm278_vm2, %v323_v10, 0  ;;  %v424_v21 = vsel %vm278_vm2, %v419_v19, 0 }
 0x28b   :  { %1014 = vmatpush3.bf16.msra.mxu1 %v328_v11 }
 0x28c   :  { %v1096_v12 = vpop.eup %1095  ;;  %1025 = vmatprep.subr.bf16.mxu1 %v1119_v3 }
 0x28d   :  { %v265_v14 = vmul.f32 %v1096_v12, %v1088_v53 }
 0x28f   :  { %v269_v15 = vpack.c.bf16 %v265_v14, %v265_v14  ;;  %v23_v14 = vld [vmem:[%s1339_s1 + $0x38] sm:$0xff]  ;;  %s1126_s1 = smov 8  }
 0x290   :  { %v1098_v16 = vpop.eup %1097 }
 0x291   :  { %v266_v18 = vmul.f32 %v1098_v16, %v1090_v55  ;;  %1010 = vmatmul.mubr.msk.bf16.vlgmr.msra.gmra.mrb[8].mxu0 %vm31_vm1, %v269_v15 }
 0x292   :  { %1020 = vmatpush3.bf16.msra.mxu0 %v376_v17  ;;  %1021 = vmatprep.mubr.msk.bf16.mxu0 %vm1120_vm0, %v1119_v3 }
 0x293   :  { %v270_v20 = vpack.c.bf16 %v266_v18, %v266_v18  ;;  %1031 = vmatprep.subr.bf16.mxu0 %v1119_v3 }
 0x295   :  { %1016 = vmatmul.mubr.msk.bf16.vlgmr.msra.gmra.mrb[8].mxu1 %vm31_vm1, %v270_v20 }
 0x296   :  { %1026 = vmatpush3.bf16.msra.mxu1 %v424_v21  ;;  %1027 = vmatprep.mubr.msk.bf16.mxu1 %vm1120_vm0, %v1119_v3 }
 0x297   :  { %1037 = vmatprep.subr.bf16.mxu1 %v1119_v3 }
 0x2ba   :  { %v257_v22 = vpop.xlane.xlu1 %256  ;;  %v260_v23 = vpop.xlane.xlu0 %259 }
 0x2bb   :  { %1099 = vrcp.f32 %v257_v22 }
 0x2bc   :  { %1101 = vrcp.f32 %v260_v23 }
 0x2be   :  { %v469_v24 = vpop.permute.xlu0 %468  ;;  %v519_v25 = vpop.permute.xlu1 %518 }
 0x2bf   :  { %v474_v31 = vsel %vm31_vm1, %v469_v24, 0  ;;  %v524_v34 = vsel %vm31_vm1, %v519_v25, 0 }
 0x2c2   :  { %v467_v30 = vpop.permute.xlu0 %466  ;;  %v517_v33 = vpop.permute.xlu1 %516 }
 0x2c5   :  { %v1100_v26 = vpop.eup %1099 }
 0x2c6   :  { %v1102_v27 = vpop.eup %1101  ;;  %v267_v28 = vmul.f32 %v1100_v26, %v1092_v63  ;;  %v569_v36 = vpop.permute.xlu0 %568 }
 0x2c7   :  { %v268_v29 = vmul.f32 %v1102_v27, %v1094_v0  ;;  %v619_v37 = vpop.permute.xlu1 %618  ;;  %v574_v38 = vsel %vm31_vm1, %v569_v36, 0 }
 0x2c8   :  { %v271_v32 = vpack.c.bf16 %v267_v28, %v267_v28  ;;  %v624_v39 = vsel %vm31_vm1, %v619_v37, 0 }
 0x2c9   :  { %v272_v35 = vpack.c.bf16 %v268_v29, %v268_v29 }
 0x2ca   :  { %1022 = vmatmul.mubr.msk.bf16.vlgmr.msra.gmra.mrb[12].mxu0 %vm31_vm1, %v271_v32  ;;  %v567_v40 = vpop.permute.xlu0 %566 }
 0x2cb   :  { %1028 = vmatmul.mubr.msk.bf16.vlgmr.msra.gmra.mrb[12].mxu1 %vm31_vm1, %v272_v35  ;;  %1032 = vmatpush3.bf16.xpose.msra.mxu0 %v474_v31  ;;  %v617_v41 = vpop.permute.xlu1 %616 }
 0x2cc   :  { %1038 = vmatpush3.bf16.xpose.msra.mxu1 %v524_v34  ;;  %1033 = vmatprep.mubr.msk.bf16.mxu0 %vm1120_vm0, %v1119_v3 }
 0x2cd   :  { %1039 = vmatprep.mubr.msk.bf16.mxu1 %vm1120_vm0, %v1119_v3  ;;  %1043 = vmatprep.subr.bf16.mxu0 %v1119_v3 }
 0x2ce   :  { %1049 = vmatprep.subr.bf16.mxu1 %v1119_v3 }
 0x2d2   :  { %1034 = vmatmul.mubr.msk.bf16.vlgmr.msra.gmra.mrb[16].mxu0 %vm31_vm1, %v467_v30 }
 0x2d3   :  { %1040 = vmatmul.mubr.msk.bf16.vlgmr.msra.gmra.mrb[16].mxu1 %vm31_vm1, %v517_v33  ;;  %1044 = vmatpush3.bf16.xpose.msra.mxu0 %v574_v38 }
 0x2d4   :  { %1050 = vmatpush3.bf16.xpose.msra.mxu1 %v624_v39  ;;  %1045 = vmatprep.mubr.msk.bf16.mxu0 %vm1120_vm0, %v1119_v3 }
 0x2d5   :  { %1051 = vmatprep.mubr.msk.bf16.mxu1 %vm1120_vm0, %v1119_v3  ;;  %1055 = vmatprep.subr.bf16.mxu0 %v1119_v3 }
 0x2d6   :  { %1061 = vmatprep.subr.bf16.mxu1 %v1119_v3 }
 0x2da   :  { %1046 = vmatmul.mubr.msk.bf16.vlgmr.msra.gmra.mrb[20].mxu0 %vm31_vm1, %v567_v40 }
 0x2db   :  { %1052 = vmatmul.mubr.msk.bf16.vlgmr.msra.gmra.mrb[20].mxu1 %vm31_vm1, %v617_v41  ;;  %1057 = vmatprep.mubr.msk.bf16.mxu0 %vm1120_vm0, %v1119_v3 }
 0x2dc   :  { %1063 = vmatprep.mubr.msk.bf16.mxu1 %vm1120_vm0, %v1119_v3 }
 0x364   :  { %v1268_v42 = vpop.f32.mrb[8].mxu0 }
 0x365   :  { %v1011_v43 = vpop.f32.mrb[9].mxu0 }
 0x366   :  { %v319_v44 = vpop.f32.mrb[10].mxu0 }
 0x367   :  { %v1012_v45 = vpop.f32.mrb[11].mxu0 }
 0x368   :  { %v1270_v46 = vpop.f32.mrb[8].mxu1 }
 0x369   :  { %v1017_v47 = vpop.f32.mrb[9].mxu1 }
 0x36a   :  { %v367_v48 = vpop.f32.mrb[10].mxu1 }
 0x36b   :  { %v1018_v49 = vpop.f32.mrb[11].mxu1 }
 0x39d   :  { %v1272_v50 = vpop.f32.mrb[12].mxu0 }
 0x39e   :  { %v1274_v51 = vpop.f32.mrb[12].mxu1  ;;  %v1023_v52 = vpop.f32.mrb[13].mxu0 }
 0x39f   :  { %v1029_v53 = vpop.f32.mrb[13].mxu1  ;;  %v415_v54 = vpop.f32.mrb[14].mxu0 }
 0x3a0   :  { %v463_v55 = vpop.f32.mrb[14].mxu1  ;;  %v1024_v56 = vpop.f32.mrb[15].mxu0 }
 0x3a1   :  { %v1030_v57 = vpop.f32.mrb[15].mxu1 }
 0x3a5   :  { %v510_v60 = vpop.f32.mrb[16].mxu0 }
 0x3a6   :  { %v511_v61 = vadd.f32 %v510_v60, %v17_v58  ;;  %v560_v62 = vpop.f32.mrb[16].mxu1  ;;  %v1035_v63 = vpop.f32.mrb[17].mxu0 }
 0x3a7   :  { %v561_v0 = vadd.f32 %v560_v62, %v19_v59  ;;  %v1041_v1 = vpop.f32.mrb[17].mxu1  ;;  %v513_v2 = vpop.f32.mrb[18].mxu0 }
 0x3a8   :  { %v563_v6 = vpop.f32.mrb[18].mxu1  ;;  %v1036_v9 = vpop.f32.mrb[19].mxu0  ;;  %v666_v10 = vsel %vm31_vm1, %v511_v61, -inf }
 0x3a9   :  { %v1042_v11 = vpop.f32.mrb[19].mxu1  ;;  %v669_v12 = vsel %vm31_vm1, %v561_v0, -inf  ;;  %667 = vmax.xlane.f32.xlu0 %v666_v10 }
 0x3aa   :  { %670 = vmax.xlane.f32.xlu1 %v669_v12 }
 0x3ad   :  { %v610_v15 = vpop.f32.mrb[20].mxu0 }
 0x3ae   :  { %v611_v16 = vadd.f32 %v610_v15, %v21_v13  ;;  %v1047_v17 = vpop.f32.mrb[21].mxu0  ;;  %v660_v18 = vpop.f32.mrb[20].mxu1 }
 0x3af   :  { %v661_v19 = vadd.f32 %v660_v18, %v23_v14  ;;  %v613_v20 = vpop.f32.mrb[22].mxu0  ;;  %v1053_v21 = vpop.f32.mrb[21].mxu1 }
 0x3b0   :  { %v1048_v22 = vpop.f32.mrb[23].mxu0  ;;  %v663_v23 = vpop.f32.mrb[22].mxu1  ;;  %v672_v24 = vsel %vm31_vm1, %v611_v16, -inf }
 0x3b1   :  { %v1054_v25 = vpop.f32.mrb[23].mxu1  ;;  %673 = vmax.xlane.f32.xlu0 %v672_v24  ;;  %v675_v26 = vsel %vm31_vm1, %v661_v19, -inf }
 0x3b5   :  { %676 = vmax.xlane.f32.xlu0 %v675_v26 }
 0x3bb   :  { %714 = vrot.lane.b32.xlu1 %v1153_v4, %s1125_s8 }
 0x436   :  { %v668_v27 = vpop.xlane.xlu0 %667 }
 0x437   :  { %v671_v28 = vpop.xlane.xlu1 %670  ;;  %v678_v29 = vsub.f32 %v511_v61, %v668_v27 }
 0x438   :  { %v679_v30 = vsub.f32 %v561_v0, %v671_v28 }
 0x439   :  { %v682_v31 = vmul.f32 1.442695, %v678_v29 }
 0x43a   :  { %v684_v32 = vmul.f32 1.442695, %v679_v30 }
 0x43b   :  { %1103 = vpow2.f32 %v682_v31  ;;  %v715_v33 = vpop.permute.xlu1 %714 }
 0x43c   :  { %1105 = vpow2.f32 %v684_v32  ;;  %v720_v34 = vsel %vm278_vm2, %v715_v33, 0 }
 0x43d   :  { %1056 = vmatpush3.bf16.msra.mxu0 %v720_v34 }
 0x43e   :  { %v674_v35 = vpop.xlane.xlu0 %673  ;;  %1067 = vmatprep.subr.bf16.mxu0 %v1119_v3 }
 0x43f   :  { %v680_v36 = vsub.f32 %v611_v16, %v674_v35 }
 0x441   :  { %v686_v37 = vmul.f32 1.442695, %v680_v36 }
 0x442   :  { %v677_v38 = vpop.xlane.xlu0 %676 }
 0x443   :  { %1107 = vpow2.f32 %v686_v37  ;;  %v681_v4 = vsub.f32 %v661_v19, %v677_v38 }
 0x445   :  { %v1104_v39 = vpop.eup %1103  ;;  %v688_v40 = vmul.f32 1.442695, %v681_v4 }
 0x446   :  { %v1106_v41 = vpop.eup %1105  ;;  %v690_v43 = vsel %vm31_vm1, %v1104_v39, 0.0 }
 0x447   :  { %1109 = vpow2.f32 %v688_v40  ;;  %v693_v44 = vsel %vm31_vm1, %v1106_v41, 0.0  ;;  %691 = vadd.xlane.f32.xlu1 %v690_v43 }
 0x448   :  { %694 = vadd.xlane.f32.xlu0 %v693_v44 }
 0x44d   :  { %v1108_v45 = vpop.eup %1107 }
 0x44e   :  { %v696_v47 = vsel %vm31_vm1, %v1108_v45, 0.0 }
 0x44f   :  { %697 = vadd.xlane.f32.xlu1 %v696_v47 }
 0x451   :  { %v1110_v48 = vpop.eup %1109 }
 0x452   :  { %v699_v49 = vsel %vm31_vm1, %v1110_v48, 0.0 }
 0x453   :  { %700 = vadd.xlane.f32.xlu0 %v699_v49 }
 0x460   :  { %810 = vrot.lane.b32.xlu1 %v1155_v5, %s1125_s8 }
 0x464   :  { %858 = vrot.lane.b32.xlu1 %v1168_v8, %s1125_s8 }
 0x469   :  { %762 = vrot.lane.b32.xlu0 %v1165_v7, %s1125_s8 }
 0x4d4   :  { %v692_v52 = vpop.xlane.xlu1 %691 }
 0x4d5   :  { %1111 = vrcp.f32 %v692_v52  ;;  %v695_v53 = vpop.xlane.xlu0 %694 }
 0x4d6   :  { %1113 = vrcp.f32 %v695_v53 }
 0x4dc   :  { %v698_v54 = vpop.xlane.xlu1 %697 }
 0x4dd   :  { %1115 = vrcp.f32 %v698_v54 }
 0x4df   :  { %v1112_v55 = vpop.eup %1111 }
 0x4e0   :  { %v1114_v56 = vpop.eup %1113  ;;  %v706_v57 = vmul.f32 %v1112_v55, %v1104_v39  ;;  %v701_v58 = vpop.xlane.xlu0 %700 }
 0x4e1   :  { %v811_v59 = vpop.permute.xlu1 %810  ;;  %1117 = vrcp.f32 %v701_v58  ;;  %v707_v61 = vmul.f32 %v1114_v56, %v1106_v41 }
 0x4e2   :  { %v710_v60 = vpack.c.bf16 %v706_v57, %v706_v57  ;;  %v816_v5 = vsel %vm278_vm2, %v811_v59, 0 }
 0x4e3   :  { %v711_v0 = vpack.c.bf16 %v707_v61, %v707_v61 }
 0x4e4   :  { %1058 = vmatmul.mubr.msk.bf16.vlgmr.msra.gmra.mrb[24].mxu0 %vm31_vm1, %v710_v60  ;;  %v763_v8 = vpop.permute.xlu0 %762 }
 0x4e5   :  { %v859_v7 = vpop.permute.xlu1 %858  ;;  %v768_v62 = vsel %vm278_vm2, %v763_v8, 0  ;;  %1068 = vmatpush3.bf16.msra.mxu0 %v816_v5  ;;  %1069 = vmatprep.mubr.msk.bf16.mxu0 %vm1120_vm0, %v1119_v3 }
 0x4e6   :  { %1062 = vmatpush3.bf16.msra.mxu1 %v768_v62  ;;  %v864_v1 = vsel %vm278_vm2, %v859_v7, 0 }
 0x4e7   :  { %v1116_v63 = vpop.eup %1115  ;;  %1073 = vmatprep.subr.bf16.mxu1 %v1119_v3 }
 0x4e8   :  { %v708_v2 = vmul.f32 %v1116_v63, %v1108_v45 }
 0x4e9   :  { %1064 = vmatmul.mubr.msk.bf16.vlgmr.msra.gmra.mrb[24].mxu1 %vm31_vm1, %v711_v0 }
 0x4ea   :  { %v712_v6 = vpack.c.bf16 %v708_v2, %v708_v2  ;;  %1074 = vmatpush3.bf16.msra.mxu1 %v864_v1  ;;  %1075 = vmatprep.mubr.msk.bf16.mxu1 %vm1120_vm0, %v1119_v3 }
 0x4eb   :  { %v1118_v9 = vpop.eup %1117 }
 0x4ec   :  { %v709_v10 = vmul.f32 %v1118_v9, %v1110_v48  ;;  %1070 = vmatmul.mubr.msk.bf16.vlgmr.msra.gmra.mrb[28].mxu0 %vm31_vm1, %v712_v6 }
 0x4ee   :  { %v713_v11 = vpack.c.bf16 %v709_v10, %v709_v10 }
 0x4f1   :  { %1076 = vmatmul.mubr.msk.bf16.vlgmr.msra.gmra.mrb[28].mxu1 %vm31_vm1, %v713_v11 }
 0x5b7   :  { %v756_v12 = vpop.f32.mrb[24].mxu0 }
 0x5b8   :  { %v1059_v13 = vpop.f32.mrb[25].mxu0  ;;  %910 = vrot.lane.b32.xlu0 %v756_v12, %s1126_s1 }
 0x5b9   :  { %v759_v14 = vpop.f32.mrb[26].mxu0 }
 0x5ba   :  { %v1060_v15 = vpop.f32.mrb[27].mxu0 }
 0x5bc   :  { %v804_v16 = vpop.f32.mrb[24].mxu1 }
 0x5bd   :  { %912 = vrot.lane.b32.xlu1 %v804_v16, %s1126_s1  ;;  %v1065_v17 = vpop.f32.mrb[25].mxu1 }
 0x5be   :  { %v807_v18 = vpop.f32.mrb[26].mxu1 }
 0x5bf   :  { %v1066_v19 = vpop.f32.mrb[27].mxu1  ;;  %v852_v20 = vpop.f32.mrb[28].mxu0 }
 0x5c0   :  { %v1071_v3 = vpop.f32.mrb[29].mxu0  ;;  %914 = vrot.lane.b32.xlu0 %v852_v20, %s1126_s1 }
 0x5c1   :  { %v855_v21 = vpop.f32.mrb[30].mxu0 }
 0x5c2   :  { %v1072_v22 = vpop.f32.mrb[31].mxu0 }
 0x5c4   :  { %v900_v23 = vpop.f32.mrb[28].mxu1 }
 0x5c5   :  { %916 = vrot.lane.b32.xlu1 %v900_v23, %s1126_s1  ;;  %v1077_v24 = vpop.f32.mrb[29].mxu1 }
 0x5c6   :  { %v903_v25 = vpop.f32.mrb[30].mxu1 }
 0x5c7   :  { %v1078_v26 = vpop.f32.mrb[31].mxu1 }
 0x62a   :  { %v911_v27 = vpop.permute.xlu0 %910 }
 0x62b   :  { %v922_v28 = vsel %vm31_vm1, %v1268_v42, %v911_v27 }
 0x62c   :  { %927 = vst.msk [vmem:[%s1340_s2] sm:$0xff] %vm926_vm3, %v922_v28 }
 0x62f   :  { %v913_v29 = vpop.permute.xlu1 %912 }
 0x630   :  { %v923_v30 = vsel %vm31_vm1, %v1270_v46, %v913_v29 }
 0x631   :  { %928 = vst.msk [vmem:[%s1340_s2 + $0x8] sm:$0xff] %vm926_vm3, %v923_v30 }
 0x632   :  { %v915_v31 = vpop.permute.xlu0 %914 }
 0x633   :  { %v924_v32 = vsel %vm31_vm1, %v1272_v50, %v915_v31 }
 0x634   :  { %929 = vst.msk [vmem:[%s1340_s2 + $0x10] sm:$0xff] %vm926_vm3, %v924_v32 }
 0x637   :  { %v917_v42 = vpop.permute.xlu1 %916 }
 0x638   :  { %v925_v33 = vsel %vm31_vm1, %v1274_v51, %v917_v42 }
 0x639   :  { %930 = vst.msk [vmem:[%s1340_s2 + $0x18] sm:$0xff] %vm926_vm3, %v925_v33 }

</bundles_post_ra>
